<compile_context>
chip_gen: v7x
topology: tpu7x:2x2x1
jax: 0.10.0
libtpu: 0.0.40
codegen_flags: <defaults>
</compile_context>

<pallas_src>
from functools import partial

import jax
import jax.numpy as jnp
from jax import lax
from jax.experimental import pallas as pl
from jax.experimental.pallas import tpu as pltpu

# Contract the last dim of both operands (A @ B^T), flash-attn style.
_NT_DIMS = (((1,), (1,)), ((), ()))


def _manifold_kernel(n_layers, r, hidden_precision, x_ref, *refs):
    """refs = [f0_grp, o0_grp, W0, (f_l, o_l, W_l) for l>=1 ..., b, out].

    Layer-0 params are in grouped (de-interleaved) order; the last layer's W is
    the folded readout row v = W_last @ A with shape (1, dims[-2]).
    """
    b_ref = refs[-2]
    out_ref = refs[-1]

    # ---- layer 0: repeat_interleave + affine + clamp, entirely off the MXU ----
    # Grouped column g*n_in + j of the expanded activation equals x[:, j]; the
    # matching factor/offset/weight rows were permuted host-side, so r clipped
    # copies of x concatenated along lanes replace the old x @ E matmul exactly.
    f0_ref, o0_ref = refs[0], refs[1]
    x = x_ref[...]
    pieces = [
        jnp.clip(x * f0_ref[g:g + 1, :] + o0_ref[g:g + 1, :], 0.0, 1.0)
        for g in range(r)
    ]
    h = jnp.concatenate(pieces, axis=1) if r > 1 else pieces[0]

    for l in range(n_layers):
        if l > 0:
            f_ref = refs[3 * l]       # (1, dims[l]) f32
            o_ref = refs[3 * l + 1]   # (1, dims[l]) f32
            # x = clamp(x * factors[l] + offsets[l], 0, 1)
            h = jnp.clip(h * f_ref[...] + o_ref[...], 0.0, 1.0)
        w_ref = refs[3 * l + 2]
        if l < n_layers - 1:
            # x = f_l(x): matmul_dtype operands, f32 accumulation on the MXU.
            h = jnp.dot(h.astype(w_ref.dtype), w_ref[...],
                        preferred_element_type=jnp.float32,
                        precision=hidden_precision)
        else:
            # Last layer folded with the readout:
            #   sum(A * (h @ W_last), 1) + b == h @ (W_last @ A) + b == v @ h^T + b
            # emitted as a lane-dense (1, tb) row.  HIGHEST keeps this tiny-K dot
            # from truncating h to bf16.
            row = lax.dot_general(w_ref[...], h, _NT_DIMS,
                                  preferred_element_type=jnp.float32,
                                  precision=lax.Precision.HIGHEST)
            out_ref[...] = (row + b_ref[0, 0])[None]   # (1, 1, tb)


def manifold_forward(x, factors, offsets, weights, A, b, *, tb=8192,
                     matmul_dtype=jnp.bfloat16,
                     vmem_limit_bytes=48 * 1024 * 1024):
    """x: (B, 12) float32. Returns (B,) float32.

    tb: rows per grid step (rounded to a multiple of 128, clamped to the
    128-rounded batch).  Budget ~2.5-3.5 KB of VMEM per row: the default 8192
    fits v7x's 64 MiB/TC; on v5e/v6e raise tb (32K-64K) and vmem_limit_bytes
    together to fully hide the per-step pipeline overhead.
    """
    n_layers = len(weights)
    B, n_in = x.shape
    d0 = factors[0].shape[0]
    r = d0 // n_in
    f32 = jnp.float32

    # Tile size: multiple of 128 (lane-dense output stores), no larger than the
    # 128-rounded batch so small inputs don't do useless work.
    tb = max(128, min(int(tb), pl.cdiv(B, 128) * 128))
    tb = pl.cdiv(tb, 128) * 128
    num_tiles = pl.cdiv(B, tb)

    hidden_precision = (lax.Precision.HIGHEST if matmul_dtype == jnp.float32
                        else lax.Precision.DEFAULT)

    # Grouped (de-interleaved) layer-0 parameters: grouped column g*n_in + j of
    # the expanded activation holds x[:, j] and must see interleaved parameter
    # index j*r + g.  Pure host-side reshapes/transposes, no extra HBM pass on x.
    f0_grp = factors[0].astype(f32).reshape(n_in, r).T             # (r, n_in)
    o0_grp = offsets[0].astype(f32).reshape(n_in, r).T             # (r, n_in)
    w0_perm = (weights[0].astype(f32).reshape(n_in, r, -1)
               .transpose(1, 0, 2).reshape(d0, -1))                # rows permuted
    w_layers = [w0_perm] + [w.astype(f32) for w in weights[1:]]

    # Fold A into the last (linear) layer: v = W_last @ A, shape (1, dims[-2]).
    v = jnp.dot(w_layers[-1], A.astype(f32),
                precision=lax.Precision.HIGHEST).reshape(1, -1)

    args = [x.astype(f32)]                                # no host-side padding
    in_specs = [pl.BlockSpec((tb, n_in), lambda i: (i, 0))]   # batch-tiled input
    for l in range(n_layers):
        if l == 0:
            f, o = f0_grp, o0_grp
        else:
            f = factors[l].astype(f32).reshape(1, -1)
            o = offsets[l].astype(f32).reshape(1, -1)
        w = v if l == n_layers - 1 else w_layers[l].astype(matmul_dtype)
        args += [f, o, w]
        in_specs += [
            pl.BlockSpec(f.shape, lambda i: (0, 0)),       # VMEM-resident params
            pl.BlockSpec(o.shape, lambda i: (0, 0)),
            pl.BlockSpec(w.shape, lambda i: (0, 0)),
        ]
    args.append(jnp.asarray(b, f32).reshape(1, 1))
    in_specs.append(pl.BlockSpec(memory_space=pltpu.MemorySpace.SMEM))  # scalar b

    # Advisory cost estimate for XLA's scheduler.
    flops = 2 * B * sum(int(w.shape[0]) * int(w.shape[1]) for w in w_layers[:-1])
    flops += 2 * B * int(v.shape[1])                          # folded readout
    flops += 4 * B * sum(int(f.shape[0]) for f in factors)    # affine + clamp
    param_bytes = sum(int(a.size) * a.dtype.itemsize for a in args[1:])
    bytes_accessed = 4 * B * (n_in + 1) + param_bytes

    out = pl.pallas_call(
        partial(_manifold_kernel, n_layers, r, hidden_precision),
        out_shape=jax.ShapeDtypeStruct((num_tiles, 1, tb), jnp.float32),
        grid=(num_tiles,),
        in_specs=in_specs,
        out_specs=pl.BlockSpec((1, 1, tb), lambda i: (i, 0, 0)),  # lane-dense rows
        compiler_params=pltpu.CompilerParams(
            # TODO(synk): on v7x verify both TensorCores are actually busy; if
            # not, switch to pltpu.CORE_PARALLEL / an explicit core split.
            dimension_semantics=("parallel",),
            vmem_limit_bytes=int(vmem_limit_bytes),
        ),
        cost_estimate=pl.CostEstimate(flops=int(flops), transcendentals=0,
                                      bytes_accessed=int(bytes_accessed)),
    )(*args)
    # Ragged last block: the extra rows are garbage but fully independent; the
    # padded tail of the output is sliced off here.
    return out.reshape(-1)[:B]


def _reference_forward(x, factors, offsets, weights, A, b):
    """Pure-JAX reference with the original (unfolded, interleaved) semantics."""
    d0 = factors[0].shape[0]
    h = jnp.repeat(x, repeats=d0 // x.shape[1], axis=1)
    for f, o, w in zip(factors, offsets, weights):
        h = jnp.clip(h * f + o, 0.0, 1.0)
        h = jnp.dot(h, w, precision=lax.Precision.HIGHEST)
    return jnp.sum(A * h, axis=1) + b


if __name__ == "__main__":
    key = jax.random.PRNGKey(0)
    B = 200                      # not a multiple of the tile -> exercises the ragged block
    dims = (24, 64, 32)          # dims[0] must be a multiple of 12
    n_layers = len(dims) - 1     # == len(flist)

    keys = jax.random.split(key, 2 + 3 * n_layers)
    k_x, k_A, k_rest = keys[0], keys[1], keys[2:]
    x = jax.random.normal(k_x, (B, 12), dtype=jnp.float32)

    # Parameters shaped as in ManifoldModel.__init__ (0.9*ones / zeros), with a
    # small per-feature perturbation so the layer-0 de-interleaving is actually
    # exercised; b nonzero to exercise the bias path.
    factors = [0.9 * jnp.ones((d,), jnp.float32)
               + 0.05 * jax.random.normal(k_rest[3 * l], (d,), jnp.float32)
               for l, d in enumerate(dims[:-1])]
    offsets = [0.05 * jax.random.normal(k_rest[3 * l + 1], (d,), jnp.float32)
               for l, d in enumerate(dims[:-1])]
    A = jax.random.normal(k_A, (dims[-1],), dtype=jnp.float32)
    b = jnp.float32(0.25)
    # TODO(synk): flist holds arbitrary callables (and save=True keeps python-side
    # xin/xout/xPLMs lists); instantiated here as deterministic linear maps
    # dims[l] -> dims[l+1], the only structure a kernel can assume.
    weights = [
        jax.random.normal(k_rest[3 * l + 2], (dims[l], dims[l + 1]), jnp.float32)
        / jnp.sqrt(jnp.float32(dims[l]))
        for l in range(n_layers)
    ]

    ref = _reference_forward(x, factors, offsets, weights, A, b)

    # Accuracy path: f32 operands + HIGHEST, small forced tile -> 2 grid steps
    # including one ragged block (exercises the no-pad path).
    out_f32 = manifold_forward(x, factors, offsets, weights, A, b,
                               tb=128, matmul_dtype=jnp.float32)
    out_f32 = jax.block_until_ready(out_f32)
    assert out_f32.shape == (B,) and out_f32.dtype == jnp.float32
    assert jnp.allclose(out_f32, ref, atol=1e-3, rtol=1e-3), (out_f32, ref)

    # Default perf path: bf16 hidden matmul (f32 accumulation); tb auto-clamps
    # to the tiny batch here, so this stays a small single-tile run.
    out_bf16 = manifold_forward(x, factors, offsets, weights, A, b)
    out_bf16 = jax.block_until_ready(out_bf16)
    assert out_bf16.shape == (B,) and out_bf16.dtype == jnp.float32
    assert jnp.allclose(out_bf16, ref, atol=5e-2, rtol=5e-2), (out_bf16, ref)

    print("KERNEL_OK")
</pallas_src>

<mosaic_0001>
module attributes {stable_mosaic.version = 11 : i64} {
  func.func @_manifold_kernel(%arg0: i32, %arg1: memref<128x12xf32, #tpu.memory_space<vmem>>, %arg2: memref<2x12xf32, #tpu.memory_space<vmem>>, %arg3: memref<2x12xf32, #tpu.memory_space<vmem>>, %arg4: memref<24x64xf32, #tpu.memory_space<vmem>>, %arg5: memref<1x64xf32, #tpu.memory_space<vmem>>, %arg6: memref<1x64xf32, #tpu.memory_space<vmem>>, %arg7: memref<1x64xf32, #tpu.memory_space<vmem>>, %arg8: memref<1x1xf32, #tpu.memory_space<smem>>, %arg9: memref<1x1x128xf32, #tpu.memory_space<vmem>>) attributes {dimension_semantics = [#tpu.dimension_semantics<parallel>], iteration_bounds = array<i64: 2>, scalar_prefetch = 0 : i64, scratch_operands = 0 : i64, tpu.core_type = #tpu.core_type<tc>, window_params = [{transform_indices = @transform_0, window_bounds = array<i64: 128, 12>}, {pipeline_mode = #tpu.pipeline_mode<synchronous>, transform_indices = @transform_1, window_bounds = array<i64: 2, 12>}, {pipeline_mode = #tpu.pipeline_mode<synchronous>, transform_indices = @transform_2, window_bounds = array<i64: 2, 12>}, {pipeline_mode = #tpu.pipeline_mode<synchronous>, transform_indices = @transform_3, window_bounds = array<i64: 24, 64>}, {pipeline_mode = #tpu.pipeline_mode<synchronous>, transform_indices = @transform_4, window_bounds = array<i64: 1, 64>}, {pipeline_mode = #tpu.pipeline_mode<synchronous>, transform_indices = @transform_5, window_bounds = array<i64: 1, 64>}, {pipeline_mode = #tpu.pipeline_mode<synchronous>, transform_indices = @transform_6, window_bounds = array<i64: 1, 64>}, {transform_indices = @transform_7, window_bounds = array<i64: 1, 1>}, {transform_indices = @transform_8, window_bounds = array<i64: 1, 1, 128>}]} {
    %c0 = arith.constant 0 : index
    %c0_0 = arith.constant 0 : index
    %0 = vector.load %arg1[%c0, %c0_0] : memref<128x12xf32, #tpu.memory_space<vmem>>, vector<128x12xf32>
    %c0_1 = arith.constant 0 : index
    %c0_2 = arith.constant 0 : index
    %1 = vector.load %arg2[%c0_1, %c0_2] : memref<2x12xf32, #tpu.memory_space<vmem>>, vector<1x12xf32>
    %2 = vector.broadcast %1 : vector<1x12xf32> to vector<128x12xf32>
    %3 = arith.mulf %0, %2 : vector<128x12xf32>
    %c0_3 = arith.constant 0 : index
    %c0_4 = arith.constant 0 : index
    %4 = vector.load %arg3[%c0_3, %c0_4] : memref<2x12xf32, #tpu.memory_space<vmem>>, vector<1x12xf32>
    %5 = vector.broadcast %4 : vector<1x12xf32> to vector<128x12xf32>
    %6 = arith.addf %3, %5 : vector<128x12xf32>
    %cst = arith.constant 0.000000e+00 : f32
    %cst_5 = arith.constant 1.000000e+00 : f32
    %7 = vector.broadcast %cst : f32 to vector<128x12xf32>
    %8 = arith.maximumf %7, %6 : vector<128x12xf32>
    %9 = vector.broadcast %cst_5 : f32 to vector<128x12xf32>
    %10 = arith.minimumf %9, %8 : vector<128x12xf32>
    %c1 = arith.constant 1 : index
    %c0_6 = arith.constant 0 : index
    %11 = vector.load %arg2[%c1, %c0_6] : memref<2x12xf32, #tpu.memory_space<vmem>>, vector<1x12xf32>
    %12 = vector.broadcast %11 : vector<1x12xf32> to vector<128x12xf32>
    %13 = arith.mulf %0, %12 : vector<128x12xf32>
    %c1_7 = arith.constant 1 : index
    %c0_8 = arith.constant 0 : index
    %14 = vector.load %arg3[%c1_7, %c0_8] : memref<2x12xf32, #tpu.memory_space<vmem>>, vector<1x12xf32>
    %15 = vector.broadcast %14 : vector<1x12xf32> to vector<128x12xf32>
    %16 = arith.addf %13, %15 : vector<128x12xf32>
    %cst_9 = arith.constant 0.000000e+00 : f32
    %cst_10 = arith.constant 1.000000e+00 : f32
    %17 = vector.broadcast %cst_9 : f32 to vector<128x12xf32>
    %18 = arith.maximumf %17, %16 : vector<128x12xf32>
    %19 = vector.broadcast %cst_10 : f32 to vector<128x12xf32>
    %20 = arith.minimumf %19, %18 : vector<128x12xf32>
    %21 = tpu.concatenate %10, %20 in 1 : vector<128x12xf32>, vector<128x12xf32> -> vector<128x24xf32>
    %c0_11 = arith.constant 0 : index
    %c0_12 = arith.constant 0 : index
    %22 = vector.load %arg4[%c0_11, %c0_12] : memref<24x64xf32, #tpu.memory_space<vmem>>, vector<24x64xf32>
    %cst_13 = arith.constant dense<0.000000e+00> : vector<128x64xf32>
    %23 = tpu.matmul %21, %22, %cst_13 {dimension_numbers = #tpu.dot_dimension_numbers<[1], [0], [0], [1], [0, 0, 1, 1], [], []>, precision = #tpu.contract_precision<fp32>} : vector<128x24xf32>, vector<24x64xf32>, vector<128x64xf32> -> vector<128x64xf32>
    %c0_14 = arith.constant 0 : index
    %c0_15 = arith.constant 0 : index
    %24 = vector.load %arg5[%c0_14, %c0_15] : memref<1x64xf32, #tpu.memory_space<vmem>>, vector<1x64xf32>
    %25 = vector.broadcast %24 : vector<1x64xf32> to vector<128x64xf32>
    %26 = arith.mulf %23, %25 : vector<128x64xf32>
    %c0_16 = arith.constant 0 : index
    %c0_17 = arith.constant 0 : index
    %27 = vector.load %arg6[%c0_16, %c0_17] : memref<1x64xf32, #tpu.memory_space<vmem>>, vector<1x64xf32>
    %28 = vector.broadcast %27 : vector<1x64xf32> to vector<128x64xf32>
    %29 = arith.addf %26, %28 : vector<128x64xf32>
    %cst_18 = arith.constant 0.000000e+00 : f32
    %cst_19 = arith.constant 1.000000e+00 : f32
    %30 = vector.broadcast %cst_18 : f32 to vector<128x64xf32>
    %31 = arith.maximumf %30, %29 : vector<128x64xf32>
    %32 = vector.broadcast %cst_19 : f32 to vector<128x64xf32>
    %33 = arith.minimumf %32, %31 : vector<128x64xf32>
    %c0_20 = arith.constant 0 : index
    %c0_21 = arith.constant 0 : index
    %34 = vector.load %arg7[%c0_20, %c0_21] : memref<1x64xf32, #tpu.memory_space<vmem>>, vector<1x64xf32>
    %cst_22 = arith.constant dense<0.000000e+00> : vector<1x128xf32>
    %35 = tpu.matmul %34, %33, %cst_22 {dimension_numbers = #tpu.dot_dimension_numbers<[1], [1], [0], [0], [0, 0, 1, 0], [], []>, precision = #tpu.contract_precision<fp32>} : vector<1x64xf32>, vector<128x64xf32>, vector<1x128xf32> -> vector<1x128xf32>
    %c0_23 = arith.constant 0 : index
    %c0_24 = arith.constant 0 : index
    %36 = memref.load %arg8[%c0_23, %c0_24] : memref<1x1xf32, #tpu.memory_space<smem>>
    %37 = vector.broadcast %36 : f32 to vector<1x128xf32>
    %38 = arith.addf %35, %37 : vector<1x128xf32>
    %39 = vector.shape_cast %38 : vector<1x128xf32> to vector<1x1x128xf32>
    %c0_25 = arith.constant 0 : index
    %c0_26 = arith.constant 0 : index
    %c0_27 = arith.constant 0 : index
    %40 = vector.load %arg9[%c0_25, %c0_26, %c0_27] : memref<1x1x128xf32, #tpu.memory_space<vmem>>, vector<1x1x128xf32>
    tpu.vector_store %arg9[%c0_25, %c0_26, %c0_27], %39 {strides = array<i32>} : memref<1x1x128xf32, #tpu.memory_space<vmem>>, vector<1x1x128xf32>,
    return
  }
  func.func @transform_0(%arg0: i32) -> (i32, i32) {
    %c0_i32 = arith.constant 0 : i32
    %c0_i32_0 = arith.constant 0 : i32
    return %arg0, %c0_i32 : i32, i32
  }
  func.func @transform_1(%arg0: i32) -> (i32, i32) {
    %c0_i32 = arith.constant 0 : i32
    %c0_i32_0 = arith.constant 0 : i32
    %c0_i32_1 = arith.constant 0 : i32
    return %c0_i32, %c0_i32_0 : i32, i32
  }
  func.func @transform_2(%arg0: i32) -> (i32, i32) {
    %c0_i32 = arith.constant 0 : i32
    %c0_i32_0 = arith.constant 0 : i32
    %c0_i32_1 = arith.constant 0 : i32
    return %c0_i32, %c0_i32_0 : i32, i32
  }
  func.func @transform_3(%arg0: i32) -> (i32, i32) {
    %c0_i32 = arith.constant 0 : i32
    %c0_i32_0 = arith.constant 0 : i32
    %c0_i32_1 = arith.constant 0 : i32
    return %c0_i32, %c0_i32_0 : i32, i32
  }
  func.func @transform_4(%arg0: i32) -> (i32, i32) {
    %c0_i32 = arith.constant 0 : i32
    %c0_i32_0 = arith.constant 0 : i32
    %c0_i32_1 = arith.constant 0 : i32
    return %c0_i32, %c0_i32_0 : i32, i32
  }
  func.func @transform_5(%arg0: i32) -> (i32, i32) {
    %c0_i32 = arith.constant 0 : i32
    %c0_i32_0 = arith.constant 0 : i32
    %c0_i32_1 = arith.constant 0 : i32
    return %c0_i32, %c0_i32_0 : i32, i32
  }
  func.func @transform_6(%arg0: i32) -> (i32, i32) {
    %c0_i32 = arith.constant 0 : i32
    %c0_i32_0 = arith.constant 0 : i32
    %c0_i32_1 = arith.constant 0 : i32
    return %c0_i32, %c0_i32_0 : i32, i32
  }
  func.func @transform_7(%arg0: i32) -> (i32, i32) {
    %c0_i32 = arith.constant 0 : i32
    %c0_i32_0 = arith.constant 0 : i32
    %c0_i32_1 = arith.constant 0 : i32
    return %c0_i32, %c0_i32_0 : i32, i32
  }
  func.func @transform_8(%arg0: i32) -> (i32, i32, i32) {
    %c0_i32 = arith.constant 0 : i32
    %c0_i32_0 = arith.constant 0 : i32
    %c0_i32_1 = arith.constant 0 : i32
    return %arg0, %c0_i32, %c0_i32_0 : i32, i32, i32
  }
}

</mosaic_0001>

<bundles_post_ra>
// kernel: tpu_custom_call.1
= control target key start
LH: loop header
LB: loop body
LE: loop exit
PB: predicated region body
PF: predicated region fallthrough
CT: control target
= control target key end

     0   :  { %s4572_s0 = inlined_call_operand.vmem [shape: f32[200,12], index: 0, kind: input, shape index: {}]   ;;  %s4573_s1 = inlined_call_operand.vmem [shape: f32[2,12], index: 1, kind: input, shape index: {}]   ;;  %s4574_s2 = inlined_call_operand.vmem [shape: f32[2,12], index: 2, kind: input, shape index: {}]   ;;  %s4575_s3 = inlined_call_operand.vmem [shape: f32[24,64], index: 3, kind: input, shape index: {}]   ;;  %s4576_s4 = inlined_call_operand.vmem [shape: f32[1,64], index: 4, kind: input, shape index: {}]   ;;  %s4577_s5 = inlined_call_operand.vmem [shape: f32[1,64], index: 5, kind: input, shape index: {}]   ;;  %s4578_s6 = inlined_call_operand.vmem [shape: f32[1,64], index: 6, kind: input, shape index: {}]   ;;  %s4579_s7 = inlined_call_operand.<no memory space> [shape: f32[1,1], index: 7, kind: input, shape index: {}]   ;;  %s4580_s8 = inlined_call_operand.hbm [shape: f32[2,1,128], index: 8, kind: output, shape index: {}]  }
   0x1   :  { %13 = sst [smem:[#allocation2]] %s4579_s7 }
   0x2   :  { %14 = vsyncpa [#allocation4], 0 }
   0x3   :  { %16 = vsyncpa [#allocation4 + $0x1], 0  ;;  %s3622_s29 = smov 0   ;;  %s3624_s30 = smov 0  }
   0x4   :  { %s3626_s9 = smov 0   ;;  %s3628_s10 = smov 0  }
   0x5 LB: > { %s2582_s7 = sadd.s32 4294967295, %s3567_s10   ;;  %s2583_s11 = sadd.s32 4294967294, %s3567_s10   ;;  %s3567_s10 = sphi %s3628_s10, %s4586_s10   ;;  %s3563_s9 = sphi %s3626_s9, %s4585_s9   ;;  %s3559_s30 = sphi %s3624_s30, %s4584_s30   ;;  %s3555_s29 = sphi %s3622_s29, %s4583_s29  }
   0x6   : > { %s3645_s12 = sadd.s32 1, %s3567_s10   ;;  %s202_s13 = sadd.s32 1, %s3563_s9 }
   0x7   : > { %s199_s14 = ssub.s32 %s3567_s10, %s3645_s12  ;;  %p212_p0 = scmp.ne.s32.totalorder %s3563_s9, %s3559_s30 }
   0x8   : > { %p200_p1 = scmp.eq.s32.totalorder %s199_s14, 0  ;;  %p213_p2 = scmp.eq.s32.totalorder %s2582_s7, 1 }
   0x9   : > { %p218_p3 = scmp.ne.s32.totalorder %s3559_s30, %s3555_s29  ;;  %p219_p4 = scmp.eq.s32.totalorder %s2583_s11, 1 }
   0xa   : > { %s3655_s15 = scalar_select %p200_p1, %s3563_s9, %s202_s13  }
   0xb   : > { %p3657_p5 = por %p213_p2, %p212_p0  ;;  %p3661_p6 = por %p219_p4, %p218_p3 }
   0xc   : > { %p2586_p7 = scmp.ge.s32.totalorder %s3567_s10, 1  ;;  %p275_p8 = scmp.lt.s32.totalorder %s3567_s10, 3 }
   0xe   : > { %p276_p9 = pnand %p2586_p7, %p275_p8 }
   0xf   : > { %s3667_s18 = sshll.u32 (!%p276_p9), %s2582_s7, 4  ;;  %v571_v0 = vld [vmem:[%s4575_s3] sm:$0xff] (!%p276_p9)  ;;  %v3676_v1 = vld [vmem:[%s4575_s3 + $0x8] sm:$0xff] (!%p276_p9)  ;;  %v3698_v6 = vld [vmem:[%s4575_s3 + $0x10] sm:$0xff] (!%p276_p9)  ;;  %s3569_s20 = smov (!%p276_p9), 12   ;;  %vm554_vm0 = vcmask (!%p276_p9), 97280  }
  0x10   : > { %279 = sbr.rel (%p276_p9) target bundleno = 1005 (0x3ed), region = 52  ;;  %p317_p10 = scmp.lt.s32.totalorder (!%p276_p9), %s3667_s18, 24  ;;  %v3682_v2 = vld [vmem:[%s4573_s1 + $0x1] ss:$0 sm:$0xff] (!%p276_p9)  ;;  %v624_v3 = vand.u32 (!%p276_p9), 4294901760, %v571_v0  ;;  %v627_v4 = vand.u32 (!%p276_p9), 4294901760, %v3676_v1 }
  0x11   : > { %v3693_v5 = vld [vmem:[%s4574_s2 + $0x1] ss:$0 sm:$0xff] (!%p276_p9)  ;;  %v3729_v18 = vand.u32 (!%p276_p9), 4294901760, %v3698_v6  ;;  %vm574_vm1 = vcmask (!%p276_p9), 195584   ;;  %vm3571_vm2 = vmmov (!%p276_p9), 0   ;;  %vm1821_vm3 = vcmask (!%p276_p9), 523264  }
  0x12   : > { %v3709_v10 = vpack.c.bf16 (!%p276_p9), %v627_v4, %v624_v3  ;;  %v3778_v51 = vsub.f32 (!%p276_p9), %v571_v0, %v624_v3  ;;  %v3784_v54 = vsub.f32 (!%p276_p9), %v3676_v1, %v627_v4  ;;  %s1819_s13 = sld [smem:[#allocation2]] (!%p276_p9)  ;;  %s310_s14 = sand.u32 (!%p276_p9), 1, %s3559_s30  }
  0x13   : > { %v3798_v0 = vsub.f32 (!%p276_p9), %v3698_v6, %v3729_v18  ;;  %s311_s19 = scalar_lea.vmem (!%p276_p9), [#allocation3], %s310_s14  ;;  %s3573_s26 = smov (!%p276_p9), [#allocation3]  }
  0x14   : > { %3205 = vmatprep.subr.bf16.mxu1 (!%p276_p9), %v3709_v10  ;;  %v854_v63 = vand.u32 (!%p276_p9), 4294901760, %v3778_v51  ;;  %s3509_s27 = sshll.u32 (!%p276_p9), %s3573_s26, 4  ;;  %s3510_s27 = int_to_ptr.vmem [resolvable:$false] %s3509_s27 }
  0x15   : > { %3207 = vmatpush3.bf16.msra.mxu1 (!%p276_p9), %v3709_v10  ;;  %s3511_s28 = scalar_lea.vmem (!%p276_p9), %s3510_s27, 32 }
  0x16   : > { %2818 = vmatprep.subr.mxu1 (!%p276_p9), %v3729_v18 }
  0x17   : > { %s318_s23 = scalar_select %p317_p10, %s3667_s18, 24 }
  0x19   : > { %s2588_s24 = sshll.u32 %s318_s23, 3  ;;  %2819 = vmatpush3.msra.mxu1 %v3729_v18  ;;  %s4530_s23 = scalar_lea.hbm %s4580_s8, %s3667_s18 }
  0x1a   : > { %s3688_s7 = scalar_lea.vmem %s4572_s0, %s2588_s24  ;;  %s2516_s24 = scalar_lea.sflag [#allocation4], %s310_s14 }
  0x1b   : > { %v3701_v7 = vld [vmem:[%s3688_s7 + $0x10] sm:$0xff]  ;;  %v3704_v8 = vld [vmem:[%s3688_s7] sm:$0xff]  ;;  %v3707_v9 = vld [vmem:[%s3688_s7 + $0x18] sm:$0xff] }
  0x1c   : > { %v423_v11 = vmul.f32 %v3682_v2, %v3701_v7  ;;  %v421_v12 = vmul.f32 %v3682_v2, %v3704_v8  ;;  %v3716_v13 = vld [vmem:[%s3688_s7 + $0x8] sm:$0xff]  ;;  %v3722_v15 = vld [vmem:[%s3688_s7 + $0x20] sm:$0xff]  ;;  %v424_v16 = vmul.f32 %v3682_v2, %v3707_v9  ;;  %v3737_v22 = vld [vmem:[%s3688_s7 + $0x38] sm:$0xff] }
  0x1d   : > { %v3719_v14 = vld [vmem:[%s3688_s7 + $0x28] sm:$0xff]  ;;  %v422_v17 = vmul.f32 %v3682_v2, %v3716_v13  ;;  %v425_v25 = vmul.f32 %v3682_v2, %v3722_v15  ;;  %v428_v32 = vmul.f32 %v3682_v2, %v3737_v22  ;;  %v3750_v33 = vld [vmem:[%s3688_s7 + $0x30] sm:$0xff]  ;;  %v3756_v37 = vld [vmem:[%s3688_s7 + $0x40] sm:$0xff] }
  0x1e   : > { %v444_v19 = vadd.f32 %v3693_v5, %v423_v11  ;;  %v442_v20 = vadd.f32 %v3693_v5, %v421_v12  ;;  %v426_v21 = vmul.f32 %v3682_v2, %v3719_v14  ;;  %v445_v23 = vadd.f32 %v3693_v5, %v424_v16  ;;  %v3753_v34 = vld [vmem:[%s3688_s7 + $0x48] sm:$0xff]  ;;  %v3760_v41 = vld [vmem:[%s3688_s7 + $0x58] sm:$0xff]  ;;  %v3770_v46 = vld [vmem:[%s3688_s7 + $0x50] sm:$0xff] }
  0x1f   : > { %v443_v24 = vadd.f32 %v3693_v5, %v422_v17  ;;  %v446_v31 = vadd.f32 %v3693_v5, %v425_v25  ;;  %v449_v43 = vadd.f32 %v3693_v5, %v428_v32  ;;  %v427_v44 = vmul.f32 %v3682_v2, %v3750_v33  ;;  %v3789_v59 = vld [vmem:[%s3688_s7 + $0x68] sm:$0xff]  ;;  %v3792_v60 = vld [vmem:[%s3688_s7 + $0x60] sm:$0xff]  ;;  %v3812_v6 = vld [vmem:[%s3688_s7 + $0x70] sm:$0xff] }
  0x20   : > { %v460_v26 = vmax.f32 %v444_v19, 0.0  ;;  %v458_v27 = vmax.f32 %v442_v20, 0.0  ;;  %v447_v28 = vadd.f32 %v3693_v5, %v426_v21  ;;  %v461_v29 = vmax.f32 %v445_v23, 0.0  ;;  %v3809_v19 = vld [vmem:[%s3688_s7 + $0x78] sm:$0xff] }
  0x21   : > { %v459_v30 = vmax.f32 %v443_v24, 0.0  ;;  %v462_v42 = vmax.f32 %v446_v31, 0.0  ;;  %v430_v45 = vmul.f32 %v3682_v2, %v3753_v34  ;;  %v429_v47 = vmul.f32 %v3682_v2, %v3756_v37 }
  0x22   : > { %v476_v35 = vmin.f32 %v460_v26, 1.0  ;;  %v474_v36 = vmin.f32 %v458_v27, 1.0  ;;  %v477_v38 = vmin.f32 %v461_v29, 1.0  ;;  %v463_v40 = vmax.f32 %v447_v28, 0.0 }
  0x23   : > { %v475_v39 = vmin.f32 %v459_v30, 1.0  ;;  %v448_v48 = vadd.f32 %v3693_v5, %v427_v44  ;;  %v451_v49 = vadd.f32 %v3693_v5, %v430_v45  ;;  %v432_v50 = vmul.f32 %v3682_v2, %v3760_v41 }
  0x24   : > { %510 = vrot.lane.b32.xlu1 %v476_v35, %s3569_s20  ;;  %506 = vrot.lane.b32.xlu0 %v474_v36, %s3569_s20  ;;  %v450_v52 = vadd.f32 %v3693_v5, %v429_v47  ;;  %v431_v53 = vmul.f32 %v3682_v2, %v3770_v46  ;;  %v479_v55 = vmin.f32 %v463_v40, 1.0  ;;  %v478_v56 = vmin.f32 %v462_v42, 1.0 }
  0x25   : > { %v465_v57 = vmax.f32 %v449_v43, 0.0  ;;  %v464_v58 = vmax.f32 %v448_v48, 0.0  ;;  %v467_v61 = vmax.f32 %v451_v49, 0.0  ;;  %v453_v62 = vadd.f32 %v3693_v5, %v432_v50 }
  0x26   : > { %v466_v1 = vmax.f32 %v450_v52, 0.0  ;;  %v452_v3 = vadd.f32 %v3693_v5, %v431_v53  ;;  %v434_v4 = vmul.f32 %v3682_v2, %v3789_v59  ;;  %v861_v11 = vand.u32 4294901760, %v3784_v54 }
  0x27   : > { %v481_v12 = vmin.f32 %v465_v57, 1.0  ;;  %v480_v16 = vmin.f32 %v464_v58, 1.0  ;;  %v433_v17 = vmul.f32 %v3682_v2, %v3792_v60  ;;  %v483_v20 = vmin.f32 %v467_v61, 1.0  ;;  %v3854_v57 = vld [vmem:[%s4574_s2] ss:$0 sm:$0xff] }
  0x28   : > { %512 = vrot.lane.b32.xlu1 %v477_v38, %s3569_s20  ;;  %508 = vrot.lane.b32.xlu0 %v475_v39, %s3569_s20  ;;  %v469_v21 = vmax.f32 %v453_v62, 0.0  ;;  %v855_v23 = vsub.f32 %v3778_v51, %v854_v63  ;;  %v3816_v24 = vand.u32 4294901760, %v3798_v0  ;;  %v482_v25 = vmin.f32 %v466_v1, 1.0 }
  0x29   : > { %v468_v26 = vmax.f32 %v452_v3, 0.0  ;;  %v455_v27 = vadd.f32 %v3693_v5, %v434_v4  ;;  %v862_v28 = vsub.f32 %v3784_v54, %v861_v11  ;;  %v454_v29 = vadd.f32 %v3693_v5, %v433_v17 }
  0x2a   : > { %v436_v30 = vmul.f32 %v3682_v2, %v3809_v19  ;;  %v435_v31 = vmul.f32 %v3682_v2, %v3812_v6  ;;  %v856_v32 = vand.u32 4294901760, %v855_v23  ;;  %v869_v36 = vsub.f32 %v3798_v0, %v3816_v24 }
  0x2b   : > { %v863_v35 = vand.u32 4294901760, %v862_v28  ;;  %v485_v38 = vmin.f32 %v469_v21, 1.0  ;;  %v484_v39 = vmin.f32 %v468_v26, 1.0  ;;  %v471_v40 = vmax.f32 %v455_v27, 0.0 }
  0x2c   : > { %516 = vrot.lane.b32.xlu1 %v479_v55, %s3569_s20  ;;  %514 = vrot.lane.b32.xlu0 %v478_v56, %s3569_s20  ;;  %v470_v43 = vmax.f32 %v454_v29, 0.0  ;;  %v457_v44 = vadd.f32 %v3693_v5, %v436_v30  ;;  %v456_v45 = vadd.f32 %v3693_v5, %v435_v31  ;;  %v870_v47 = vand.u32 4294901760, %v869_v36 }
  0x2d   : > { %v3208_v42 = vpack.c.bf16 %v863_v35, %v856_v32  ;;  %v3835_v2 = vpack.c.bf16 %v3784_v54, %v3778_v51  ;;  %v487_v48 = vmin.f32 %v471_v40, 1.0  ;;  %v3844_v51 = vpack.c.bf16 %v861_v11, %v854_v63  ;;  %v2589_v54 = vld [vmem:[%s4573_s1] ss:$0 sm:$0xff] }
  0x2e   : > { %v486_v49 = vmin.f32 %v470_v43, 1.0  ;;  %v473_v50 = vmax.f32 %v457_v44, 0.0  ;;  %v472_v52 = vmax.f32 %v456_v45, 0.0  ;;  %v349_v55 = vmul.f32 %v2589_v54, %v3701_v7 }
  0x2f   : > { %3209 = vmatprep.subr.bf16.mxu0 %v3208_v42  ;;  %v347_v56 = vmul.f32 %v2589_v54, %v3704_v8  ;;  %v350_v58 = vmul.f32 %v2589_v54, %v3707_v9  ;;  %v348_v61 = vmul.f32 %v2589_v54, %v3716_v13  ;;  %v352_v1 = vmul.f32 %v2589_v54, %v3719_v14 }
  0x30   : > { %520 = vrot.lane.b32.xlu1 %v481_v12, %s3569_s20  ;;  %518 = vrot.lane.b32.xlu0 %v480_v16, %s3569_s20  ;;  %v489_v5 = vmin.f32 %v473_v50, 1.0  ;;  %v488_v53 = vmin.f32 %v472_v52, 1.0  ;;  %v370_v62 = vadd.f32 %v3854_v57, %v349_v55  ;;  %v351_v3 = vmul.f32 %v2589_v54, %v3722_v15 }
  0x31   : > { %3211 = vmatpush3.bf16.msra.mxu0 %v3208_v42  ;;  %v368_v63 = vadd.f32 %v3854_v57, %v347_v56  ;;  %v354_v7 = vmul.f32 %v2589_v54, %v3737_v22  ;;  %v353_v8 = vmul.f32 %v2589_v54, %v3750_v33  ;;  %v356_v4 = vmul.f32 %v2589_v54, %v3753_v34 }
  0x32   : > { %2848 = vmatprep.subr.mxu0 %v870_v47  ;;  %v355_v11 = vmul.f32 %v2589_v54, %v3756_v37  ;;  %v386_v12 = vmax.f32 %v370_v62, 0.0  ;;  %v371_v13 = vadd.f32 %v3854_v57, %v350_v58  ;;  %v369_v16 = vadd.f32 %v3854_v57, %v348_v61 }
  0x33   : > { %v384_v9 = vmax.f32 %v368_v63, 0.0  ;;  %v373_v17 = vadd.f32 %v3854_v57, %v352_v1  ;;  %v372_v14 = vadd.f32 %v3854_v57, %v351_v3  ;;  %v375_v15 = vadd.f32 %v3854_v57, %v354_v7 }
  0x34   : > { %524 = vrot.lane.b32.xlu1 %v483_v20, %s3569_s20  ;;  %522 = vrot.lane.b32.xlu0 %v482_v25, %s3569_s20  ;;  %v358_v22 = vmul.f32 %v2589_v54, %v3760_v41  ;;  %v374_v33 = vadd.f32 %v3854_v57, %v353_v8  ;;  %v377_v34 = vadd.f32 %v3854_v57, %v356_v4  ;;  %v402_v20 = vmin.f32 %v386_v12, 1.0 }
  0x35   : > { %2849 = vmatpush3.msra.mxu0 %v870_v47  ;;  %v376_v37 = vadd.f32 %v3854_v57, %v355_v11  ;;  %v400_v21 = vmin.f32 %v384_v9, 1.0  ;;  %v387_v23 = vmax.f32 %v371_v13, 0.0  ;;  %v385_v25 = vmax.f32 %v369_v16, 0.0 }
  0x36   : > { %3213 = vmatprep.subr.bf16.mxu0 %v3835_v2  ;;  %v357_v26 = vmul.f32 %v2589_v54, %v3770_v46  ;;  %v360_v27 = vmul.f32 %v2589_v54, %v3789_v59  ;;  %v359_v28 = vmul.f32 %v2589_v54, %v3792_v60  ;;  %v389_v29 = vmax.f32 %v373_v17, 0.0 }
  0x37   : > { %v362_v30 = vmul.f32 %v2589_v54, %v3809_v19  ;;  %v361_v41 = vmul.f32 %v2589_v54, %v3812_v6  ;;  %v388_v31 = vmax.f32 %v372_v14, 0.0  ;;  %v391_v32 = vmax.f32 %v375_v15, 0.0 }
  0x38   : > { %528 = vrot.lane.b32.xlu1 %v485_v38, %s3569_s20  ;;  %526 = vrot.lane.b32.xlu0 %v484_v39, %s3569_s20  ;;  %v390_v38 = vmax.f32 %v374_v33, 0.0  ;;  %v393_v39 = vmax.f32 %v377_v34, 0.0  ;;  %v392_v40 = vmax.f32 %v376_v37, 0.0  ;;  %v379_v42 = vadd.f32 %v3854_v57, %v358_v22 }
  0x39   : > { %v403_v43 = vmin.f32 %v387_v23, 1.0  ;;  %v401_v60 = vmin.f32 %v385_v25, 1.0  ;;  %v405_v6 = vmin.f32 %v389_v29, 1.0  ;;  %v378_v45 = vadd.f32 %v3854_v57, %v357_v26 }
  0x3a   : > { %v407_v50 = vmin.f32 %v391_v32, 1.0  ;;  %v3890_v54 = vmin.f32 %v393_v39, 1.0  ;;  %v3892_v55 = vmin.f32 %v392_v40, 1.0  ;;  %v395_v56 = vmax.f32 %v379_v42, 0.0 }
  0x3b   : > { %v394_v7 = vmax.f32 %v378_v45, 0.0  ;;  %v3906_v8 = vadd.f32 %v3854_v57, %v360_v27  ;;  %v3914_v9 = vadd.f32 %v3854_v57, %v359_v28  ;;  %v3920_v15 = vadd.f32 %v3854_v57, %v362_v30 }
  0x3c   : > { %532 = vrot.lane.b32.xlu1 %v487_v48, %s3569_s20  ;;  %530 = vrot.lane.b32.xlu0 %v486_v49, %s3569_s20  ;;  %v404_v49 = vmin.f32 %v388_v31, 1.0  ;;  %v3917_v14 = vmin.f32 %v395_v56, 1.0  ;;  %v3923_v22 = vadd.f32 %v3854_v57, %v361_v41 }
  0x3d   : > { %v410_v25 = vmin.f32 %v394_v7, 1.0  ;;  %v397_v29 = vmax.f32 %v3906_v8, 0.0 }
  0x3f   : > { %v413_v8 = vmin.f32 %v397_v29, 1.0 }
  0x40   : > { %536 = vrot.lane.b32.xlu1 %v489_v5, %s3569_s20  ;;  %534 = vrot.lane.b32.xlu0 %v488_v53, %s3569_s20  ;;  %v406_v53 = vmin.f32 %v390_v38, 1.0  ;;  %s2528_s20 = sshll.u32 %s311_s19, 4  ;;  %s4532_s20 = int_to_ptr.vmem [resolvable:$true] %s2528_s20 }
  0x41   : > { %s3505_s25 = scalar_lea.vmem %s4532_s20, 16  ;;  %p3512_p0 = scmp.lt.s32.totalorder %s4532_s20, %s3510_s27 }
  0x42   : > { %p3506_p11 = scmp.ne.s32.totalorder %s4532_s20, %s3505_s25  ;;  %p3513_p1 = scmp.lt.s32.totalorder %s3511_s28, %s3505_s25 }
  0x44   : > { %p3507_p12 = pnand %p3506_p11, %p3657_p5  ;;  %p3514_p2 = por %p3513_p1, %p3512_p0 }
  0x46   : > { %p3508_p13 = pneg %p3507_p12 }
  0x48   : > { %p3515_p3 = pnand %p3514_p2, %p3508_p13 }
  0x96   : > { %v511_v35 = vpop.permute.xlu1 %510  ;;  %v507_v36 = vpop.permute.xlu0 %506 }
  0x97   : > { %v557_v46 = vsel %vm554_vm0, %v402_v20, %v511_v35  ;;  %v555_v59 = vsel %vm554_vm0, %v400_v21, %v507_v36  ;;  %v396_v35 = vmax.f32 %v3914_v9, 0.0 }
  0x98   : > { %v582_v44 = vsel %vm574_vm1, %v557_v46, 0  ;;  %v576_v19 = vsel %vm574_vm1, %v555_v59, 0 }
  0x99   : > { %v3886_v47 = vand.u32 4294901760, %v582_v44  ;;  %v3888_v48 = vand.u32 4294901760, %v576_v19 }
  0x9a   : > { %v513_v52 = vpop.permute.xlu1 %512  ;;  %v509_v5 = vpop.permute.xlu0 %508 }
  0x9b   : > { %v3895_v58 = vsub.f32 %v582_v44, %v3886_v47  ;;  %v3898_v61 = vsub.f32 %v576_v19, %v3888_v48  ;;  %v558_v62 = vsel %vm554_vm0, %v403_v43, %v513_v52  ;;  %v556_v63 = vsel %vm554_vm0, %v401_v60, %v509_v5  ;;  %2850 = vmatprep.mubr.f32.mxu0 %v3888_v48 }
  0x9c   : > { %v585_v1 = vsel %vm574_vm1, %v558_v62, 0  ;;  %v579_v3 = vsel %vm574_vm1, %v556_v63, 0  ;;  %v399_v43 = vmax.f32 %v3920_v15, 0.0 }
  0x9d   : > { %v3908_v4 = vand.u32 4294901760, %v585_v1  ;;  %v3910_v11 = vand.u32 4294901760, %v579_v3  ;;  %v693_v12 = vand.u32 4294901760, %v3898_v61  ;;  %v713_v17 = vand.u32 4294901760, %v3895_v58 }
  0x9e   : > { %v517_v13 = vpop.permute.xlu1 %516  ;;  %v515_v16 = vpop.permute.xlu0 %514 }
  0x9f   : > { %v3926_v33 = vsub.f32 %v585_v1, %v3908_v4  ;;  %v3929_v34 = vsub.f32 %v579_v3, %v3910_v11  ;;  %v560_v37 = vsel %vm554_vm0, %v405_v6, %v517_v13  ;;  %v559_v20 = vsel %vm554_vm0, %v404_v49, %v515_v16  ;;  %2851 = vmatmul.mubr.f32.vlgmr.msra.gmra.mrb[0].mxu0 %v3910_v11 }
  0xa0   : > { %v591_v21 = vsel %vm574_vm1, %v560_v37, 0  ;;  %v588_v23 = vsel %vm574_vm1, %v559_v20, 0  ;;  %3215 = vmatpush3.bf16.msra.mxu0 %v3835_v2  ;;  %2853 = vmatprep.mubr.f32.mxu0 %v3886_v47  ;;  %v694_v57 = vsub.f32 %v3898_v61, %v693_v12  ;;  %v714_v31 = vsub.f32 %v3895_v58, %v713_v17 }
  0xa1   : > { %v3941_v26 = vand.u32 4294901760, %v591_v21  ;;  %v3943_v27 = vand.u32 4294901760, %v588_v23  ;;  %v703_v28 = vand.u32 4294901760, %v3929_v34  ;;  %2878 = vmatprep.subr.mxu0 %v3798_v0  ;;  %v723_v32 = vand.u32 4294901760, %v3926_v33 }
  0xa2   : > { %v521_v30 = vpop.permute.xlu1 %520  ;;  %v519_v41 = vpop.permute.xlu0 %518  ;;  %v695_v2 = vand.u32 4294901760, %v694_v57  ;;  %v398_v6 = vmax.f32 %v3923_v22, 0.0  ;;  %v715_v52 = vand.u32 4294901760, %v714_v31 }
  0xa3   : > { %v3954_v36 = vsub.f32 %v591_v21, %v3941_v26  ;;  %v3957_v38 = vsub.f32 %v588_v23, %v3943_v27  ;;  %v562_v39 = vsel %vm554_vm0, %v407_v50, %v521_v30  ;;  %v561_v40 = vsel %vm554_vm0, %v406_v53, %v519_v41  ;;  %2854 = vmatmul.mubr.f32.gmra.mrb[2].mxu0 %v3908_v4 }
  0xa4   : > { %v597_v42 = vsel %vm574_vm1, %v562_v39, 0  ;;  %v594_v46 = vsel %vm574_vm1, %v561_v40, 0  ;;  %2820 = vmatprep.mubr.f32.mxu1 %v695_v2  ;;  %2856 = vmatprep.mubr.f32.mxu0 %v3943_v27  ;;  %v704_v59 = vsub.f32 %v3929_v34, %v703_v28  ;;  %v724_v5 = vsub.f32 %v3926_v33, %v723_v32 }
  0xa5   : > { %v3969_v60 = vand.u32 4294901760, %v597_v42  ;;  %v3971_v44 = vand.u32 4294901760, %v594_v46  ;;  %v733_v19 = vand.u32 4294901760, %v3957_v38  ;;  %2879 = vmatpush3.msra.mxu0 %v3798_v0  ;;  %v743_v53 = vand.u32 4294901760, %v3954_v36 }
  0xa6   : > { %v525_v45 = vpop.permute.xlu1 %524  ;;  %v523_v49 = vpop.permute.xlu0 %522  ;;  %v705_v50 = vand.u32 4294901760, %v704_v59  ;;  %3217 = vmatprep.subr.bf16.mxu0 %v3709_v10  ;;  %v725_v22 = vand.u32 4294901760, %v724_v5 }
  0xa7   : > { %v3982_v56 = vsub.f32 %v597_v42, %v3969_v60  ;;  %v3985_v62 = vsub.f32 %v594_v46, %v3971_v44  ;;  %v564_v0 = vsel %vm554_vm0, %v3890_v54, %v525_v45  ;;  %v563_v63 = vsel %vm554_vm0, %v3892_v55, %v523_v49  ;;  %2857 = vmatmul.mubr.f32.gmra.mrb[4].mxu0 %v3941_v26 }
  0xa8   : > { %v603_v1 = vsel %vm574_vm1, %v564_v0, 0  ;;  %v600_v3 = vsel %vm574_vm1, %v563_v63, 0  ;;  %2821 = vmatmul.mubr.f32.vlgmr.msra.gmra.mrb[0].mxu1 %v705_v50  ;;  %2859 = vmatprep.mubr.f32.mxu0 %v3971_v44  ;;  %v734_v7 = vsub.f32 %v3957_v38, %v733_v19  ;;  %v412_v55 = vmin.f32 %v396_v35, 1.0 }
  0xa9   : > { %v3998_v9 = vand.u32 4294901760, %v603_v1  ;;  %v4000_v54 = vand.u32 4294901760, %v600_v3  ;;  %2823 = vmatprep.mubr.f32.mxu1 %v715_v52  ;;  %v753_v13 = vand.u32 4294901760, %v3985_v62  ;;  %v744_v20 = vsub.f32 %v3954_v36, %v743_v53 }
  0xaa   : > { %v529_v16 = vpop.permute.xlu1 %528  ;;  %v527_v15 = vpop.permute.xlu0 %526  ;;  %v735_v37 = vand.u32 4294901760, %v734_v7  ;;  %v763_v21 = vand.u32 4294901760, %v3982_v56  ;;  %v415_v35 = vmin.f32 %v399_v43, 1.0 }
  0xab   : > { %v4008_v23 = vsub.f32 %v603_v1, %v3998_v9  ;;  %v4011_v57 = vsub.f32 %v600_v3, %v4000_v54  ;;  %v566_v29 = vsel %vm554_vm0, %v3917_v14, %v529_v16  ;;  %v565_v30 = vsel %vm554_vm0, %v410_v25, %v527_v15  ;;  %2860 = vmatmul.mubr.f32.gmra.mrb[6].mxu0 %v3969_v60 }
  0xac   : > { %v609_v41 = vsel %vm574_vm1, %v566_v29, 0  ;;  %v606_v2 = vsel %vm574_vm1, %v565_v30, 0  ;;  %2824 = vmatmul.mubr.f32.gmra.mrb[2].mxu1 %v725_v22  ;;  %2862 = vmatprep.mubr.f32.mxu0 %v4000_v54  ;;  %v754_v31 = vsub.f32 %v3985_v62, %v753_v13  ;;  %v414_v14 = vmin.f32 %v398_v6, 1.0 }
  0xad   : > { %v4023_v39 = vand.u32 4294901760, %v609_v41  ;;  %v4025_v40 = vand.u32 4294901760, %v606_v2  ;;  %2826 = vmatprep.mubr.f32.mxu1 %v735_v37  ;;  %v773_v25 = vand.u32 4294901760, %v4011_v57  ;;  %v745_v59 = vand.u32 4294901760, %v744_v20 }
  0xae   : > { %v533_v42 = vpop.permute.xlu1 %532  ;;  %v531_v46 = vpop.permute.xlu0 %530  ;;  %v755_v45 = vand.u32 4294901760, %v754_v31  ;;  %v764_v49 = vsub.f32 %v3982_v56, %v763_v21  ;;  %v783_v50 = vand.u32 4294901760, %v4008_v23 }
  0xaf   : > { %v4033_v43 = vsub.f32 %v609_v41, %v4023_v39  ;;  %v4036_v52 = vsub.f32 %v606_v2, %v4025_v40  ;;  %v568_v6 = vsel %vm554_vm0, %v413_v8, %v533_v42  ;;  %v567_v5 = vsel %vm554_vm0, %v412_v55, %v531_v46  ;;  %2863 = vmatmul.mubr.f32.gmra.mrb[8].mxu0 %v3998_v9 }
  0xb0   : > { %v615_v0 = vsel %vm574_vm1, %v568_v6, 0  ;;  %v612_v63 = vsel %vm574_vm1, %v567_v5, 0  ;;  %2827 = vmatmul.mubr.f32.gmra.mrb[4].mxu1 %v745_v59  ;;  %2865 = vmatprep.mubr.f32.mxu0 %v4025_v40  ;;  %v774_v1 = vsub.f32 %v4011_v57, %v773_v25  ;;  %v765_v15 = vand.u32 4294901760, %v764_v49 }
  0xb1   : > { %v4047_v3 = vand.u32 4294901760, %v615_v0  ;;  %v4049_v7 = vand.u32 4294901760, %v612_v63  ;;  %2829 = vmatprep.mubr.f32.mxu1 %v755_v45  ;;  %v793_v8 = vand.u32 4294901760, %v4036_v52  ;;  %v784_v37 = vsub.f32 %v4008_v23, %v783_v50 }
  0xb2   : > { %v537_v55 = vpop.permute.xlu1 %536  ;;  %v535_v16 = vpop.permute.xlu0 %534  ;;  %v775_v22 = vand.u32 4294901760, %v774_v1  ;;  %v803_v20 = vand.u32 4294901760, %v4033_v43 }
  0xb3   : > { %v4057_v29 = vsub.f32 %v615_v0, %v4047_v3  ;;  %v4060_v30 = vsub.f32 %v612_v63, %v4049_v7  ;;  %v570_v41 = vsel %vm554_vm0, %v415_v35, %v537_v55  ;;  %v569_v2 = vsel %vm554_vm0, %v414_v14, %v535_v16  ;;  %2866 = vmatmul.mubr.f32.gmra.mrb[10].mxu0 %v4023_v39 }
  0xb4   : > { %v621_v31 = vsel %vm574_vm1, %v570_v41, 0  ;;  %v618_v42 = vsel %vm574_vm1, %v569_v2, 0  ;;  %2830 = vmatmul.mubr.f32.gmra.mrb[6].mxu1 %v765_v15  ;;  %2868 = vmatprep.mubr.f32.mxu0 %v4049_v7  ;;  %v794_v46 = vsub.f32 %v4036_v52, %v793_v8  ;;  %v785_v14 = vand.u32 4294901760, %v784_v37 }
  0xb5   : > { %v4071_v59 = vand.u32 4294901760, %v621_v31  ;;  %v4073_v45 = vand.u32 4294901760, %v618_v42  ;;  %2832 = vmatprep.mubr.f32.mxu1 %v775_v22  ;;  %v813_v35 = vand.u32 4294901760, %v4060_v30  ;;  %v804_v6 = vsub.f32 %v4033_v43, %v803_v20 }
  0xb6   : > { %v795_v49 = vand.u32 4294901760, %v794_v46  ;;  %v823_v5 = vand.u32 4294901760, %v4057_v29 }
  0xb7   : > { %v842_v0 = vsub.f32 %v621_v31, %v4071_v59  ;;  %v832_v63 = vsub.f32 %v618_v42, %v4073_v45  ;;  %2869 = vmatmul.mubr.f32.gmra.mrb[12].mxu0 %v4047_v3  ;;  %v814_v1 = vsub.f32 %v4060_v30, %v813_v35  ;;  %v805_v15 = vand.u32 4294901760, %v804_v6 }
  0xb8   : > { %2833 = vmatmul.mubr.f32.gmra.mrb[8].mxu1 %v785_v14  ;;  %2871 = vmatprep.mubr.f32.mxu0 %v4073_v45  ;;  %v824_v22 = vsub.f32 %v4057_v29, %v823_v5 }
  0xb9   : > { %2835 = vmatprep.mubr.f32.mxu1 %v795_v49  ;;  %v815_v55 = vand.u32 4294901760, %v814_v1  ;;  %v833_v16 = vand.u32 4294901760, %v832_v63  ;;  %v843_v37 = vand.u32 4294901760, %v842_v0 }
  0xba   : > { %v825_v31 = vand.u32 4294901760, %v824_v22 }
  0xbb   : > { %2872 = vmatmul.mubr.f32.gmra.mrb[14].mxu0 %v4071_v59  ;;  %v834_v41 = vsub.f32 %v832_v63, %v833_v16  ;;  %v844_v42 = vsub.f32 %v842_v0, %v843_v37 }
  0xbc   : > { %2836 = vmatmul.mubr.f32.gmra.mrb[10].mxu1 %v805_v15  ;;  %2880 = vmatprep.mubr.f32.mxu0 %v3898_v61 }
  0xbd   : > { %2838 = vmatprep.mubr.f32.mxu1 %v815_v55  ;;  %v835_v2 = vand.u32 4294901760, %v834_v41  ;;  %v845_v46 = vand.u32 4294901760, %v844_v42 }
  0xbf   : > { %2881 = vmatmul.mubr.f32.vlgmr.msra.gmra.mrb[0].mxu0 %v3929_v34 }
  0xc0   : > { %2839 = vmatmul.mubr.f32.gmra.mrb[12].mxu1 %v825_v31  ;;  %3219 = vmatpush3.bf16.msra.mxu0 %v3709_v10 }
  0xc1   : > { %2841 = vmatprep.mubr.f32.mxu1 %v835_v2  ;;  %2883 = vmatprep.mubr.f32.mxu0 %v3895_v58 }
  0xc2   : > { %2908 = vmatprep.subr.mxu0 %v3729_v18 }
  0xc3   : > { %2884 = vmatmul.mubr.f32.gmra.mrb[2].mxu0 %v3926_v33 }
  0xc4   : > { %2842 = vmatmul.mubr.f32.gmra.mrb[14].mxu1 %v845_v46  ;;  %2886 = vmatprep.mubr.f32.mxu0 %v3957_v38  ;;  %v4197_v38 = vld [vmem:[%s4576_s4] ss:$0 sm:$0xff] }
  0xc5   : > { %2909 = vmatpush3.msra.mxu0 %v3729_v18 }
  0xc6   : > { %3221 = vmatprep.subr.bf16.mxu0 %v3844_v51 }
  0xc7   : > { %2887 = vmatmul.mubr.f32.gmra.mrb[4].mxu0 %v3954_v36 }
  0xc8   : > { %2889 = vmatprep.mubr.f32.mxu0 %v3985_v62 }
  0xcb   : > { %2890 = vmatmul.mubr.f32.gmra.mrb[6].mxu0 %v3982_v56 }
  0xcc   : > { %2892 = vmatprep.mubr.f32.mxu0 %v4011_v57 }
  0xcf   : > { %2893 = vmatmul.mubr.f32.gmra.mrb[8].mxu0 %v4008_v23 }
  0xd0   : > { %2895 = vmatprep.mubr.f32.mxu0 %v4036_v52 }
  0xd3   : > { %2896 = vmatmul.mubr.f32.gmra.mrb[10].mxu0 %v4033_v43 }
  0xd4   : > { %2898 = vmatprep.mubr.f32.mxu0 %v4060_v30 }
  0xd7   : > { %2899 = vmatmul.mubr.f32.gmra.mrb[12].mxu0 %v4057_v29 }
  0xd8   : > { %2901 = vmatprep.mubr.f32.mxu0 %v832_v63 }
  0xdb   : > { %2902 = vmatmul.mubr.f32.gmra.mrb[14].mxu0 %v842_v0 }
  0xdc   : > { %2910 = vmatprep.mubr.f32.mxu0 %v693_v12 }
  0xdf   : > { %2911 = vmatmul.mubr.f32.vlgmr.msra.gmra.mrb[0].mxu0 %v703_v28 }
  0xe0   : > { %3223 = vmatpush3.bf16.msra.mxu0 %v3844_v51  ;;  %2913 = vmatprep.mubr.f32.mxu0 %v713_v17 }
  0xe1   : > { %2938 = vmatprep.subr.mxu0 %v3816_v24 }
  0xe3   : > { %2914 = vmatmul.mubr.f32.gmra.mrb[2].mxu0 %v723_v32  ;;  %v3572_v32 = vmov 0.0  }
  0xe4   : > { %2916 = vmatprep.mubr.f32.mxu0 %v733_v19  ;;  %2939 = vmatpush3.msra.mxu0 %v3816_v24  ;;  %v4202_v19 = vld [vmem:[%s4577_s5] ss:$0 sm:$0xff] }
  0xe5   : > { %3225 = vmatprep.subr.bf16.mxu0 %v3709_v10  ;;  %3096 = vmatprep.mubr.msk.f32.mxu1 %vm3571_vm2, %v3572_v32 }
  0xe7   : > { %2917 = vmatmul.mubr.f32.gmra.mrb[4].mxu0 %v743_v53 }
  0xe8   : > { %2919 = vmatprep.mubr.f32.mxu0 %v753_v13 }
  0xeb   : > { %2920 = vmatmul.mubr.f32.gmra.mrb[6].mxu0 %v763_v21 }
  0xec   : > { %2922 = vmatprep.mubr.f32.mxu0 %v773_v25 }
  0xef   : > { %2923 = vmatmul.mubr.f32.gmra.mrb[8].mxu0 %v783_v50 }
  0xf0   : > { %2925 = vmatprep.mubr.f32.mxu0 %v793_v8 }
  0xf3   : > { %2926 = vmatmul.mubr.f32.gmra.mrb[10].mxu0 %v803_v20 }
  0xf4   : > { %2928 = vmatprep.mubr.f32.mxu0 %v813_v35 }
  0xf7   : > { %2929 = vmatmul.mubr.f32.gmra.mrb[12].mxu0 %v823_v5 }
  0xf8   : > { %2931 = vmatprep.mubr.f32.mxu0 %v833_v16 }
  0xfb   : > { %2932 = vmatmul.mubr.f32.gmra.mrb[14].mxu0 %v843_v37 }
  0xfc   : > { %2940 = vmatprep.mubr.f32.mxu0 %v3888_v48 }
  0xff   : > { %2941 = vmatmul.mubr.f32.vlgmr.msra.gmra.mrb[0].mxu0 %v3910_v11 }
 0x100   : > { %3227 = vmatpush3.bf16.msra.mxu0 %v3709_v10  ;;  %2943 = vmatprep.mubr.f32.mxu0 %v3886_v47 }
 0x101   : > { %2968 = vmatprep.subr.mxu0 %v3729_v18 }
 0x103   : > { %2944 = vmatmul.mubr.f32.gmra.mrb[2].mxu0 %v3908_v4 }
 0x104   : > { %2946 = vmatprep.mubr.f32.mxu0 %v3943_v27  ;;  %2969 = vmatpush3.msra.mxu0 %v3729_v18 }
 0x107   : > { %2947 = vmatmul.mubr.f32.gmra.mrb[4].mxu0 %v3941_v26 }
 0x108   : > { %2949 = vmatprep.mubr.f32.mxu0 %v3971_v44 }
 0x10b   : > { %2950 = vmatmul.mubr.f32.gmra.mrb[6].mxu0 %v3969_v60 }
 0x10c   : > { %2952 = vmatprep.mubr.f32.mxu0 %v4000_v54 }
 0x10f   : > { %2953 = vmatmul.mubr.f32.gmra.mrb[8].mxu0 %v3998_v9 }
 0x110   : > { %2955 = vmatprep.mubr.f32.mxu0 %v4025_v40 }
 0x113   : > { %2956 = vmatmul.mubr.f32.gmra.mrb[10].mxu0 %v4023_v39 }
 0x114   : > { %2958 = vmatprep.mubr.f32.mxu0 %v4049_v7 }
 0x117   : > { %2959 = vmatmul.mubr.f32.gmra.mrb[12].mxu0 %v4047_v3 }
 0x118   : > { %2961 = vmatprep.mubr.f32.mxu0 %v4073_v45 }
 0x11b   : > { %2962 = vmatmul.mubr.f32.gmra.mrb[14].mxu0 %v4071_v59 }
 0x11c   : > { %2970 = vmatprep.mubr.f32.mxu0 %v3888_v48  ;;  %v3570_v48 = vmov 0.0|0.0  }
 0x11d   : > { %3228 = vmatprep.subr.bf16.mxu0 %v3570_v48  ;;  %3276 = vmatprep.subr.bf16.mxu1 %v3570_v48 }
 0x11f   : > { %2971 = vmatmul.mubr.f32.vlgmr.msra.gmra.mrb[0].mxu0 %v3910_v11 }
 0x120   : > { %2973 = vmatprep.mubr.f32.mxu0 %v3886_v47 }
 0x123   : > { %2974 = vmatmul.mubr.f32.gmra.mrb[2].mxu0 %v3908_v4 }
 0x124   : > { %2976 = vmatprep.mubr.f32.mxu0 %v3943_v27 }
 0x127   : > { %2977 = vmatmul.mubr.f32.gmra.mrb[4].mxu0 %v3941_v26 }
 0x128   : > { %2979 = vmatprep.mubr.f32.mxu0 %v3971_v44 }
 0x12b   : > { %2980 = vmatmul.mubr.f32.gmra.mrb[6].mxu0 %v3969_v60 }
 0x12c   : > { %2982 = vmatprep.mubr.f32.mxu0 %v4000_v54 }
 0x12f   : > { %2983 = vmatmul.mubr.f32.gmra.mrb[8].mxu0 %v3998_v9 }
 0x130   : > { %2985 = vmatprep.mubr.f32.mxu0 %v4025_v40 }
 0x133   : > { %2986 = vmatmul.mubr.f32.gmra.mrb[10].mxu0 %v4023_v39 }
 0x134   : > { %2988 = vmatprep.mubr.f32.mxu0 %v4049_v7 }
 0x137   : > { %2989 = vmatmul.mubr.f32.gmra.mrb[12].mxu0 %v4047_v3 }
 0x138   : > { %2991 = vmatprep.mubr.f32.mxu0 %v4073_v45 }
 0x13b   : > { %2992 = vmatmul.mubr.f32.gmra.mrb[14].mxu0 %v4071_v59 }
 0x13c   : > { %3026 = vmatprep.mubr.msk.f32.mxu0 %vm3571_vm2, %v3572_v32 }
 0x17b   : > { %v2822_v10 = vpop.f32.mrb[0].mxu1 }
 0x17c   : > { %v697_v18 = vpop.f32.mrb[1].mxu1 }
 0x17f   : > { %v2825_v24 = vpop.f32.mrb[2].mxu1 }
 0x180   : > { %v717_v51 = vpop.f32.mrb[3].mxu1 }
 0x183   : > { %v2828_v47 = vpop.f32.mrb[4].mxu1 }
 0x184   : > { %v737_v58 = vpop.f32.mrb[5].mxu1 }
 0x187   : > { %v2831_v61 = vpop.f32.mrb[6].mxu1 }
 0x188   : > { %v757_v4 = vpop.f32.mrb[7].mxu1 }
 0x18b   : > { %v4174_v11 = vpop.f32.mrb[8].mxu1 }
 0x18c   : > { %v4176_v12 = vpop.f32.mrb[9].mxu1 }
 0x18f   : > { %v4178_v17 = vpop.f32.mrb[10].mxu1 }
 0x190   : > { %v4180_v33 = vpop.f32.mrb[11].mxu1 }
 0x193   : > { %v4182_v34 = vpop.f32.mrb[12].mxu1 }
 0x194   : > { %v4184_v26 = vpop.f32.mrb[13].mxu1 }
 0x197   : > { %v4186_v27 = vpop.f32.mrb[14].mxu1 }
 0x198   : > { %v4188_v28 = vpop.f32.mrb[15].mxu1 }
 0x1f2   : > { %v2972_v36 = vpop.f32.mrb[0].mxu0 }
 0x1f3   : > { %v3372_v60 = vadd.f32 %v2972_v36, %v2822_v10  ;;  %v1646_v44 = vpop.f32.mrb[1].mxu0 }
 0x1f4   : > { %v3373_v53 = vadd.f32 %v1646_v44, %v697_v18 }
 0x1f5   : > { %v1748_v56 = vmul.f32 %v3372_v60, %v4197_v38 }
 0x1f6   : > { %v1747_v62 = vmul.f32 %v3373_v53, %v4197_v38  ;;  %v2975_v9 = vpop.f32.mrb[2].mxu0 }
 0x1f7   : > { %v1771_v54 = vadd.f32 %v4202_v19, %v1748_v56  ;;  %v3374_v13 = vadd.f32 %v2975_v9, %v2825_v24  ;;  %v1658_v21 = vpop.f32.mrb[3].mxu0 }
 0x1f8   : > { %v1770_v23 = vadd.f32 %v4202_v19, %v1747_v62  ;;  %v3375_v57 = vadd.f32 %v1658_v21, %v717_v51 }
 0x1f9   : > { %v1787_v39 = vmax.f32 %v1771_v54, 0.0  ;;  %v1750_v40 = vmul.f32 %v3374_v13, %v4197_v38 }
 0x1fa   : > { %v1786_v25 = vmax.f32 %v1770_v23, 0.0  ;;  %v1749_v50 = vmul.f32 %v3375_v57, %v4197_v38  ;;  %v2978_v43 = vpop.f32.mrb[4].mxu0 }
 0x1fb   : > { %v1803_v52 = vmin.f32 %v1787_v39, 1.0  ;;  %v1773_v3 = vadd.f32 %v4202_v19, %v1750_v40  ;;  %v3376_v7 = vadd.f32 %v2978_v43, %v2828_v47  ;;  %v1670_v8 = vpop.f32.mrb[5].mxu0 }
 0x1fc   : > { %v1802_v20 = vmin.f32 %v1786_v25, 1.0  ;;  %v1772_v29 = vadd.f32 %v4202_v19, %v1749_v50  ;;  %v3377_v30 = vadd.f32 %v1670_v8, %v737_v58 }
 0x1fd   : > { %v1829_v59 = vsel %vm1821_vm3, %v1803_v52, 0  ;;  %v1789_v45 = vmax.f32 %v1773_v3, 0.0  ;;  %v1752_v35 = vmul.f32 %v3376_v7, %v4197_v38 }
 0x1fe   : > { %v1877_v14 = vand.u32 4294901760, %v1829_v59  ;;  %v1826_v49 = vsel %vm1821_vm3, %v1802_v20, 0  ;;  %v1788_v6 = vmax.f32 %v1772_v29, 0.0  ;;  %v1751_v5 = vmul.f32 %v3377_v30, %v4197_v38  ;;  %v2981_v0 = vpop.f32.mrb[6].mxu0 }
 0x1ff   : > { %v1874_v63 = vand.u32 4294901760, %v1826_v49  ;;  %v1805_v1 = vmin.f32 %v1789_v45, 1.0  ;;  %v1775_v55 = vadd.f32 %v4202_v19, %v1752_v35  ;;  %v3378_v16 = vadd.f32 %v2981_v0, %v2831_v61  ;;  %v1682_v15 = vpop.f32.mrb[7].mxu0 }
 0x200   : > { %v4217_v22 = vsub.f32 %v1829_v59, %v1877_v14  ;;  %v1804_v37 = vmin.f32 %v1788_v6, 1.0  ;;  %v1774_v41 = vadd.f32 %v4202_v19, %v1751_v5  ;;  %v3379_v2 = vadd.f32 %v1682_v15, %v757_v4 }
 0x201   : > { %v4220_v31 = vsub.f32 %v1826_v49, %v1874_v63  ;;  %v4223_v42 = vsel %vm1821_vm3, %v1805_v1, 0  ;;  %v1791_v46 = vmax.f32 %v1775_v55, 0.0  ;;  %v1754_v10 = vmul.f32 %v3378_v16, %v4197_v38 }
 0x202   : > { %v1883_v18 = vand.u32 4294901760, %v4223_v42  ;;  %v4228_v24 = vsel %vm1821_vm3, %v1804_v37, 0  ;;  %v1790_v51 = vmax.f32 %v1774_v41, 0.0  ;;  %v1753_v47 = vmul.f32 %v3379_v2, %v4197_v38  ;;  %v2984_v58 = vpop.f32.mrb[8].mxu0 }
 0x203   : > { %v1880_v61 = vand.u32 4294901760, %v4228_v24  ;;  %v1807_v4 = vmin.f32 %v1791_v46, 1.0  ;;  %v1777_v36 = vadd.f32 %v4202_v19, %v1754_v10  ;;  %v3380_v60 = vadd.f32 %v2984_v58, %v4174_v11  ;;  %v1694_v44 = vpop.f32.mrb[9].mxu0 }
 0x204   : > { %v4237_v53 = vsub.f32 %v4223_v42, %v1883_v18  ;;  %v1806_v56 = vmin.f32 %v1790_v51, 1.0  ;;  %v1776_v62 = vadd.f32 %v4202_v19, %v1753_v47  ;;  %v3381_v9 = vadd.f32 %v1694_v44, %v4176_v12 }
 0x205   : > { %v4242_v54 = vsub.f32 %v4228_v24, %v1880_v61  ;;  %v4245_v13 = vsel %vm1821_vm3, %v1807_v4, 0  ;;  %v1793_v21 = vmax.f32 %v1777_v36, 0.0  ;;  %v1756_v11 = vmul.f32 %v3380_v60, %v4197_v38 }
 0x206   : > { %v1889_v23 = vand.u32 4294901760, %v4245_v13  ;;  %v4250_v57 = vsel %vm1821_vm3, %v1806_v56, 0  ;;  %v1792_v39 = vmax.f32 %v1776_v62, 0.0  ;;  %v1755_v40 = vmul.f32 %v3381_v9, %v4197_v38  ;;  %v2987_v25 = vpop.f32.mrb[10].mxu0 }
 0x207   : > { %v1886_v12 = vand.u32 4294901760, %v4250_v57  ;;  %v1809_v50 = vmin.f32 %v1793_v21, 1.0  ;;  %v1779_v43 = vadd.f32 %v4202_v19, %v1756_v11  ;;  %v4255_v52 = vpack.c.bf16 %v1877_v14, %v1874_v63  ;;  %v1706_v3 = vpop.f32.mrb[11].mxu0 }
 0x208   : > { %v4260_v7 = vsub.f32 %v4245_v13, %v1889_v23  ;;  %v1808_v8 = vmin.f32 %v1792_v39, 1.0  ;;  %v1778_v20 = vadd.f32 %v4202_v19, %v1755_v40  ;;  %v3277_v29 = vpack.c.bf16 %v4217_v22, %v4220_v31 }
 0x209   : > { %v4266_v30 = vsub.f32 %v4250_v57, %v1886_v12  ;;  %v4269_v59 = vsel %vm1821_vm3, %v1809_v50, 0  ;;  %v1795_v45 = vmax.f32 %v1779_v43, 0.0  ;;  %3230 = vmatpush3.bf16.xpose.msra.mxu0 %v4255_v52  ;;  %v3382_v35 = vadd.f32 %v2987_v25, %v4178_v17 }
 0x20a   : > { %v1895_v14 = vand.u32 4294901760, %v4269_v59  ;;  %v1844_v49 = vsel %vm1821_vm3, %v1808_v8, 0  ;;  %v1794_v6 = vmax.f32 %v1778_v20, 0.0  ;;  %3278 = vmatpush3.bf16.xpose.msra.mxu1 %v3277_v29  ;;  %v3383_v5 = vadd.f32 %v1706_v3, %v4180_v33  ;;  %v2990_v0 = vpop.f32.mrb[12].mxu0  ;;  %3231 = vmatprep.subr.bf16.mxu0 %v3570_v48 }
 0x20b   : > { %v1892_v63 = vand.u32 4294901760, %v1844_v49  ;;  %v1811_v1 = vmin.f32 %v1795_v45, 1.0  ;;  %v1758_v55 = vmul.f32 %v3382_v35, %v4197_v38  ;;  %v3384_v16 = vadd.f32 %v2990_v0, %v4182_v34  ;;  %v1718_v15 = vpop.f32.mrb[13].mxu0  ;;  %3279 = vmatprep.subr.bf16.mxu1 %v3570_v48 }
 0x20c   : > { %v4281_v17 = vsub.f32 %v4269_v59, %v1895_v14  ;;  %v1810_v37 = vmin.f32 %v1794_v6, 1.0  ;;  %v1757_v41 = vmul.f32 %v3383_v5, %v4197_v38  ;;  %v3385_v33 = vadd.f32 %v1718_v15, %v4184_v26 }
 0x20d   : > { %v4285_v2 = vsub.f32 %v1844_v49, %v1892_v63  ;;  %v1853_v46 = vsel %vm1821_vm3, %v1811_v1, 0  ;;  %v1781_v10 = vadd.f32 %v4202_v19, %v1758_v55  ;;  %v1760_v24 = vmul.f32 %v3384_v16, %v4197_v38 }
 0x20e   : > { %v1901_v34 = vand.u32 4294901760, %v1853_v46  ;;  %v1850_v51 = vsel %vm1821_vm3, %v1810_v37, 0  ;;  %v1780_v47 = vadd.f32 %v4202_v19, %v1757_v41  ;;  %v1759_v58 = vmul.f32 %v3385_v33, %v4197_v38  ;;  %v2993_v4 = vpop.f32.mrb[14].mxu0 }
 0x20f   : > { %v1898_v36 = vand.u32 4294901760, %v1850_v51  ;;  %v1797_v60 = vmax.f32 %v1781_v10, 0.0  ;;  %v1783_v26 = vadd.f32 %v4202_v19, %v1760_v24  ;;  %v4296_v44 = vpack.c.bf16 %v1883_v18, %v1880_v61  ;;  %v1730_v56 = vpop.f32.mrb[15].mxu0 }
 0x210   : > { %v4298_v62 = vsub.f32 %v1853_v46, %v1901_v34  ;;  %v1796_v9 = vmax.f32 %v1780_v47, 0.0  ;;  %v1782_v21 = vadd.f32 %v4202_v19, %v1759_v58  ;;  %v3280_v11 = vpack.c.bf16 %v4237_v53, %v4242_v54 }
 0x211   : > { %v4303_v57 = vsub.f32 %v1850_v51, %v1898_v36  ;;  %v1813_v39 = vmin.f32 %v1797_v60, 1.0  ;;  %v1799_v40 = vmax.f32 %v1783_v26, 0.0  ;;  %3233 = vmatpush3.bf16.xpose.msra.mxu0 %v4296_v44  ;;  %v3386_v25 = vadd.f32 %v2993_v4, %v4186_v27 }
 0x212   : > { %v1812_v42 = vmin.f32 %v1796_v9, 1.0  ;;  %v1798_v18 = vmax.f32 %v1782_v21, 0.0  ;;  %3281 = vmatpush3.bf16.xpose.msra.mxu1 %v3280_v11  ;;  %v3387_v61 = vadd.f32 %v1730_v56, %v4188_v28  ;;  %3234 = vmatprep.subr.bf16.mxu0 %v3570_v48  ;;  %v4311_v50 = vpack.c.bf16 %v1889_v23, %v1886_v12 }
 0x213   : > { %v1859_v43 = vsel %vm1821_vm3, %v1813_v39, 0  ;;  %v1815_v3 = vmin.f32 %v1799_v40, 1.0  ;;  %v1762_v8 = vmul.f32 %v3386_v25, %v4197_v38  ;;  %3282 = vmatprep.subr.bf16.mxu1 %v3570_v48  ;;  %v3283_v27 = vpack.c.bf16 %v4260_v7, %v4266_v30 }
 0x214   : > { %v1907_v20 = vand.u32 4294901760, %v1859_v43  ;;  %v1856_v29 = vsel %vm1821_vm3, %v1812_v42, 0  ;;  %v1814_v28 = vmin.f32 %v1798_v18, 1.0  ;;  %v1761_v59 = vmul.f32 %v3387_v61, %v4197_v38 }
 0x215   : > { %v1904_v45 = vand.u32 4294901760, %v1856_v29  ;;  %v1865_v13 = vsel %vm1821_vm3, %v1815_v3, 0  ;;  %v1785_v23 = vadd.f32 %v4202_v19, %v1762_v8  ;;  %v4322_v12 = vpack.c.bf16 %v1895_v14, %v1892_v63 }
 0x216   : > { %v4324_v35 = vsub.f32 %v1859_v43, %v1907_v20  ;;  %v1913_v49 = vand.u32 4294901760, %v1865_v13  ;;  %v1862_v6 = vsel %vm1821_vm3, %v1814_v28, 0  ;;  %v1784_v5 = vadd.f32 %v4202_v19, %v1761_v59 }
 0x217   : > { %v4328_v0 = vsub.f32 %v1856_v29, %v1904_v45  ;;  %v1910_v1 = vand.u32 4294901760, %v1862_v6  ;;  %v1801_v55 = vmax.f32 %v1785_v23, 0.0  ;;  %v3286_v38 = vpack.c.bf16 %v4281_v17, %v4285_v2 }
 0x218   : > { %v4332_v16 = vsub.f32 %v1865_v13, %v1913_v49  ;;  %v1800_v15 = vmax.f32 %v1784_v5, 0.0  ;;  %v4334_v37 = vpack.c.bf16 %v1901_v34, %v1898_v36  ;;  %v3289_v14 = vpack.c.bf16 %v4298_v62, %v4303_v57 }
 0x219   : > { %v4338_v63 = vsub.f32 %v1862_v6, %v1910_v1  ;;  %v1817_v41 = vmin.f32 %v1801_v55, 1.0  ;;  %3236 = vmatpush3.bf16.xpose.msra.mxu0 %v4311_v50  ;;  %v4341_v19 = vpack.c.bf16 %v1907_v20, %v1904_v45  ;;  %v3292_v33 = vpack.c.bf16 %v4324_v35, %v4328_v0 }
 0x21a   : > { %v1816_v46 = vmin.f32 %v1800_v15, 1.0  ;;  %3284 = vmatpush3.bf16.xpose.msra.mxu1 %v3283_v27  ;;  %3237 = vmatprep.subr.bf16.mxu0 %v3570_v48  ;;  %v4346_v10 = vpack.c.bf16 %v1913_v49, %v1910_v1  ;;  %v1967_v24 = vand.u32 4294901760, %v4220_v31  ;;  %v1974_v34 = vand.u32 4294901760, %v4217_v22 }
 0x21b   : > { %v1871_v51 = vsel %vm1821_vm3, %v1817_v41, 0  ;;  %3285 = vmatprep.subr.bf16.mxu1 %v3570_v48  ;;  %v3295_v47 = vpack.c.bf16 %v4332_v16, %v4338_v63  ;;  %v1981_v58 = vand.u32 4294901760, %v4242_v54  ;;  %v1988_v4 = vand.u32 4294901760, %v4237_v53 }
 0x21c   : > { %v1919_v36 = vand.u32 4294901760, %v1871_v51  ;;  %v1868_v60 = vsel %vm1821_vm3, %v1816_v46, 0  ;;  %v1968_v26 = vsub.f32 %v4220_v31, %v1967_v24  ;;  %v1975_v56 = vsub.f32 %v4217_v22, %v1974_v34 }
 0x21d   : > { %v1916_v9 = vand.u32 4294901760, %v1868_v60  ;;  %v1982_v21 = vsub.f32 %v4242_v54, %v1981_v58  ;;  %v1989_v11 = vsub.f32 %v4237_v53, %v1988_v4  ;;  %v1995_v39 = vand.u32 4294901760, %v4266_v30 }
 0x21e   : > { %v4366_v40 = vsub.f32 %v1871_v51, %v1919_v36  ;;  %v1969_v25 = vand.u32 4294901760, %v1968_v26  ;;  %v1976_v42 = vand.u32 4294901760, %v1975_v56  ;;  %v2002_v18 = vand.u32 4294901760, %v4260_v7 }
 0x21f   : > { %v4369_v61 = vsub.f32 %v1868_v60, %v1916_v9  ;;  %v4371_v43 = vpack.c.bf16 %v1919_v36, %v1916_v9  ;;  %v1983_v3 = vand.u32 4294901760, %v1982_v21  ;;  %v1990_v8 = vand.u32 4294901760, %v1989_v11 }
 0x220   : > { %v4373_v27 = vpack.c.bf16 %v1976_v42, %v1969_v25  ;;  %v1996_v54 = vsub.f32 %v4266_v30, %v1995_v39  ;;  %v2003_v53 = vsub.f32 %v4260_v7, %v2002_v18  ;;  %v2009_v20 = vand.u32 4294901760, %v4285_v2 }
 0x221   : > { %3239 = vmatpush3.bf16.xpose.msra.mxu0 %v4322_v12  ;;  %v3298_v29 = vpack.c.bf16 %v4366_v40, %v4369_v61  ;;  %v4381_v28 = vpack.c.bf16 %v1990_v8, %v1983_v3  ;;  %v2016_v59 = vand.u32 4294901760, %v4281_v17  ;;  %v2023_v45 = vand.u32 4294901760, %v4303_v57 }
 0x222   : > { %3287 = vmatpush3.bf16.xpose.msra.mxu1 %v3286_v38  ;;  %3240 = vmatprep.subr.bf16.mxu0 %v3570_v48  ;;  %v1997_v13 = vand.u32 4294901760, %v1996_v54  ;;  %v2004_v30 = vand.u32 4294901760, %v2003_v53  ;;  %v2010_v7 = vsub.f32 %v4285_v2, %v2009_v20  ;;  %v2030_v23 = vand.u32 4294901760, %v4298_v62 }
 0x223   : > { %3288 = vmatprep.subr.bf16.mxu1 %v3570_v48  ;;  %v2017_v49 = vsub.f32 %v4281_v17, %v2016_v59  ;;  %v2024_v6 = vsub.f32 %v4303_v57, %v2023_v45  ;;  %v2037_v5 = vand.u32 4294901760, %v4328_v0  ;;  %v2044_v1 = vand.u32 4294901760, %v4324_v35 }
 0x224   : > { %v4393_v55 = vpack.c.bf16 %v2004_v30, %v1997_v13  ;;  %v2011_v38 = vand.u32 4294901760, %v2010_v7  ;;  %v2031_v15 = vsub.f32 %v4298_v62, %v2030_v23  ;;  %v2051_v41 = vand.u32 4294901760, %v4338_v63 }
 0x225   : > { %v2018_v2 = vand.u32 4294901760, %v2017_v49  ;;  %v2025_v46 = vand.u32 4294901760, %v2024_v6  ;;  %v2038_v51 = vsub.f32 %v4328_v0, %v2037_v5  ;;  %v2045_v36 = vsub.f32 %v4324_v35, %v2044_v1 }
 0x226   : > { %v2032_v17 = vand.u32 4294901760, %v2031_v15  ;;  %v2052_v60 = vsub.f32 %v4338_v63, %v2051_v41  ;;  %v2058_v26 = vand.u32 4294901760, %v4332_v16  ;;  %v2065_v56 = vand.u32 4294901760, %v4369_v61 }
 0x227   : > { %v3262_v9 = vpack.c.bf16 %v2018_v2, %v2011_v38  ;;  %v2039_v21 = vand.u32 4294901760, %v2038_v51  ;;  %v2046_v11 = vand.u32 4294901760, %v2045_v36  ;;  %v2072_v25 = vand.u32 4294901760, %v4366_v40 }
 0x228   : > { %v3265_v42 = vpack.c.bf16 %v2032_v17, %v2025_v46  ;;  %v2053_v3 = vand.u32 4294901760, %v2052_v60  ;;  %v2059_v8 = vsub.f32 %v4332_v16, %v2058_v26  ;;  %v2066_v54 = vsub.f32 %v4369_v61, %v2065_v56 }
 0x229   : > { %3242 = vmatpush3.bf16.xpose.msra.mxu0 %v4334_v37  ;;  %v3268_v53 = vpack.c.bf16 %v2046_v11, %v2039_v21  ;;  %v2073_v13 = vsub.f32 %v4366_v40, %v2072_v25  ;;  %v4411_v30 = vpack.c.bf16 %v1974_v34, %v1967_v24  ;;  %v4413_v7 = vpack.c.bf16 %v1988_v4, %v1981_v58 }
 0x22a   : > { %3290 = vmatpush3.bf16.xpose.msra.mxu1 %v3289_v14  ;;  %3243 = vmatprep.subr.bf16.mxu0 %v3570_v48  ;;  %v2060_v49 = vand.u32 4294901760, %v2059_v8  ;;  %v2067_v6 = vand.u32 4294901760, %v2066_v54  ;;  %v4419_v38 = vpack.c.bf16 %v2002_v18, %v1995_v39  ;;  %v4421_v15 = vpack.c.bf16 %v2016_v59, %v2009_v20  ;;  %v1818_v14 = vld [vmem:[%s4578_s6] sm:$0x1] }
 0x22b   : > { %3291 = vmatprep.subr.bf16.mxu1 %v3570_v48  ;;  %v2074_v31 = vand.u32 4294901760, %v2073_v13  ;;  %v4424_v22 = vpack.c.bf16 %v2030_v23, %v2023_v45  ;;  %v4426_v24 = vpack.c.bf16 %v2044_v1, %v2037_v5  ;;  %v4428_v34 = vpack.c.bf16 %v2058_v26, %v2051_v41 }
 0x22c   : > { %v3271_v58 = vpack.c.bf16 %v2060_v49, %v2053_v3  ;;  %v4430_v62 = vpack.c.bf16 %v2072_v25, %v2065_v56  ;;  %v1823_v4 = vsel %vm1821_vm3, %v1818_v14, 0 }
 0x22d   : > { %v3274_v57 = vpack.c.bf16 %v2074_v31, %v2067_v6  ;;  %v4442_v39 = vand.u32 4294901760, %v1823_v4 }
 0x22f   : > { %v1955_v18 = vsub.f32 %v1823_v4, %v4442_v39 }
 0x231   : > { %3245 = vmatpush3.bf16.xpose.msra.mxu0 %v4341_v19  ;;  %v1956_v35 = vand.u32 4294901760, %v1955_v18 }
 0x232   : > { %3293 = vmatpush3.bf16.xpose.msra.mxu1 %v3292_v33  ;;  %3246 = vmatprep.subr.bf16.mxu0 %v3570_v48 }
 0x233   : > { %3294 = vmatprep.subr.bf16.mxu1 %v3570_v48  ;;  %v1957_v0 = vsub.f32 %v1955_v18, %v1956_v35 }
 0x235   : > { %v1958_v33 = vand.u32 4294901760, %v1957_v0 }
 0x239   : > { %3248 = vmatpush3.bf16.xpose.msra.mxu0 %v4346_v10 }
 0x23a   : > { %3296 = vmatpush3.bf16.xpose.msra.mxu1 %v3295_v47  ;;  %3249 = vmatprep.subr.bf16.mxu0 %v3570_v48 }
 0x23b   : > { %3297 = vmatprep.subr.bf16.mxu1 %v3570_v48 }
 0x241   : > { %3251 = vmatpush3.bf16.xpose.msra.mxu0 %v4371_v43 }
 0x242   : > { %3299 = vmatpush3.bf16.xpose.msra.mxu1 %v3298_v29  ;;  %3252 = vmatprep.subr.bf16.mxu0 %v3570_v48 }
 0x243   : > { %3300 = vmatprep.subr.bf16.mxu1 %v3570_v48 }
 0x248   : > { %3027 = vmatmul.mubr.f32.vlgmr.msra.gmra.mrb[16].mxu0 %v1958_v33 }
 0x249   : > { %3254 = vmatpush3.bf16.xpose.msra.mxu0 %v4373_v27  ;;  %3097 = vmatmul.mubr.f32.vlgmr.msra.gmra.mrb[16].mxu1 %v1955_v18 }
 0x24a   : > { %3302 = vmatpush3.bf16.xpose.msra.mxu1 %v4255_v52  ;;  %3255 = vmatprep.subr.bf16.mxu0 %v3570_v48 }
 0x24b   : > { %3303 = vmatprep.subr.bf16.mxu1 %v3570_v48  ;;  %3131 = vmatprep.mubr.msk.f32.mxu1 %vm3571_vm2, %v3572_v32 }
 0x24c   : > { %3061 = vmatprep.mubr.msk.f32.mxu0 %vm3571_vm2, %v3572_v32 }
 0x251   : > { %3257 = vmatpush3.bf16.xpose.msra.mxu0 %v4381_v28 }
 0x252   : > { %3305 = vmatpush3.bf16.xpose.msra.mxu1 %v4296_v44  ;;  %3258 = vmatprep.subr.bf16.mxu0 %v3570_v48 }
 0x253   : > { %3306 = vmatprep.subr.bf16.mxu1 %v3570_v48 }
 0x259   : > { %3260 = vmatpush3.bf16.xpose.msra.mxu0 %v4393_v55 }
 0x25a   : > { %3308 = vmatpush3.bf16.xpose.msra.mxu1 %v4311_v50  ;;  %3261 = vmatprep.subr.bf16.mxu0 %v3570_v48 }
 0x25b   : > { %3309 = vmatprep.subr.bf16.mxu1 %v3570_v48 }
 0x261   : > { %3263 = vmatpush3.bf16.xpose.msra.mxu0 %v3262_v9 }
 0x262   : > { %3311 = vmatpush3.bf16.xpose.msra.mxu1 %v4322_v12  ;;  %3264 = vmatprep.subr.bf16.mxu0 %v3570_v48 }
 0x263   : > { %3312 = vmatprep.subr.bf16.mxu1 %v3570_v48 }
 0x269   : > { %3266 = vmatpush3.bf16.xpose.msra.mxu0 %v3265_v42 }
 0x26a   : > { %3314 = vmatpush3.bf16.xpose.msra.mxu1 %v4334_v37  ;;  %3267 = vmatprep.subr.bf16.mxu0 %v3570_v48 }
 0x26b   : > { %3315 = vmatprep.subr.bf16.mxu1 %v3570_v48 }
 0x271   : > { %3269 = vmatpush3.bf16.xpose.msra.mxu0 %v3268_v53 }
 0x272   : > { %3317 = vmatpush3.bf16.xpose.msra.mxu1 %v4341_v19  ;;  %3270 = vmatprep.subr.bf16.mxu0 %v3570_v48 }
 0x273   : > { %3318 = vmatprep.subr.bf16.mxu1 %v3570_v48 }
 0x279   : > { %3272 = vmatpush3.bf16.xpose.msra.mxu0 %v3271_v58 }
 0x27a   : > { %3320 = vmatpush3.bf16.xpose.msra.mxu1 %v4346_v10  ;;  %3273 = vmatprep.subr.bf16.mxu0 %v3570_v48 }
 0x27b   : > { %3321 = vmatprep.subr.bf16.mxu1 %v3570_v48 }
 0x281   : > { %3275 = vmatpush3.bf16.xpose.msra.mxu0 %v3274_v57 }
 0x282   : > { %3323 = vmatpush3.bf16.xpose.msra.mxu1 %v4371_v43 }
 0x283   : > { %3324 = vmatprep.subr.bf16.mxu1 %v3570_v48 }
 0x288   : > { %3062 = vmatmul.mubr.f32.vlgmr.msra.gmra.mrb[16].mxu0 %v4442_v39 }
 0x289   : > { %3132 = vmatmul.mubr.f32.vlgmr.msra.gmra.mrb[16].mxu1 %v1956_v35 }
 0x28a   : > { %3326 = vmatpush3.bf16.xpose.msra.mxu1 %v4411_v30  ;;  %3166 = vmatprep.mubr.msk.f32.mxu1 %vm3571_vm2, %v3572_v32 }
 0x28b   : > { %3327 = vmatprep.subr.bf16.mxu1 %v3570_v48 }
 0x292   : > { %3329 = vmatpush3.bf16.xpose.msra.mxu1 %v4413_v7 }
 0x293   : > { %3330 = vmatprep.subr.bf16.mxu1 %v3570_v48 }
 0x29a   : > { %3332 = vmatpush3.bf16.xpose.msra.mxu1 %v4419_v38 }
 0x29b   : > { %3333 = vmatprep.subr.bf16.mxu1 %v3570_v48 }
 0x2a2   : > { %3335 = vmatpush3.bf16.xpose.msra.mxu1 %v4421_v15 }
 0x2a3   : > { %3336 = vmatprep.subr.bf16.mxu1 %v3570_v48 }
 0x2aa   : > { %3338 = vmatpush3.bf16.xpose.msra.mxu1 %v4424_v22 }
 0x2ab   : > { %3339 = vmatprep.subr.bf16.mxu1 %v3570_v48 }
 0x2b2   : > { %3341 = vmatpush3.bf16.xpose.msra.mxu1 %v4426_v24 }
 0x2b3   : > { %3342 = vmatprep.subr.bf16.mxu1 %v3570_v48 }
 0x2ba   : > { %3344 = vmatpush3.bf16.xpose.msra.mxu1 %v4428_v34 }
 0x2bb   : > { %3345 = vmatprep.subr.bf16.mxu1 %v3570_v48 }
 0x2c2   : > { %3347 = vmatpush3.bf16.xpose.msra.mxu1 %v4430_v62 }
 0x2c3   : > { %3348 = vmatprep.subr.bf16.mxu1 %v3570_v48 }
 0x2c9   : > { %3167 = vmatmul.mubr.f32.vlgmr.msra.gmra.mrb[16].mxu1 %v4442_v39 }
 0x2ca   : > { %3350 = vmatpush3.bf16.xpose.msra.mxu1 %v4255_v52  ;;  %3201 = vmatprep.mubr.msk.f32.mxu1 %vm3571_vm2, %v3572_v32 }
 0x2cb   : > { %3351 = vmatprep.subr.bf16.mxu1 %v3570_v48 }
 0x2d2   : > { %3353 = vmatpush3.bf16.xpose.msra.mxu1 %v4296_v44  ;;  %v1820_v44 = vstv %s1819_s13 }
 0x2d3   : > { %3354 = vmatprep.subr.bf16.mxu1 %v3570_v48 }
 0x2da   : > { %3356 = vmatpush3.bf16.xpose.msra.mxu1 %v4311_v50 }
 0x2db   : > { %3357 = vmatprep.subr.bf16.mxu1 %v3570_v48 }
 0x2e2   : > { %3359 = vmatpush3.bf16.xpose.msra.mxu1 %v4322_v12 }
 0x2e3   : > { %3360 = vmatprep.subr.bf16.mxu1 %v3570_v48 }
 0x2ea   : > { %3362 = vmatpush3.bf16.xpose.msra.mxu1 %v4334_v37 }
 0x2eb   : > { %3363 = vmatprep.subr.bf16.mxu1 %v3570_v48 }
 0x2f2   : > { %3365 = vmatpush3.bf16.xpose.msra.mxu1 %v4341_v19 }
 0x2f3   : > { %3366 = vmatprep.subr.bf16.mxu1 %v3570_v48 }
 0x2fa   : > { %3368 = vmatpush3.bf16.xpose.msra.mxu1 %v4346_v10 }
 0x2fb   : > { %3369 = vmatprep.subr.bf16.mxu1 %v3570_v48 }
 0x302   : > { %3371 = vmatpush3.bf16.xpose.msra.mxu1 %v4371_v43 }
 0x309   : > { %3202 = vmatmul.mubr.f32.vlgmr.msra.gmra.mrb[16].mxu1 %v4442_v39 }
 0x35b   : > { %v2111_v32 = vpop.f32.mrb[16].mxu0 }
 0x35c   : > { %v3063_v52 = vpop.f32.mrb[17].mxu0  ;;  %v3388_v50 = vadd.f32 %v2111_v32, %v1820_v44 }
 0x3dc   : > { %v2510_v12 = vpop.f32.mrb[16].mxu1 }
 0x3dd   : > { %v3389_v16 = vadd.f32 %v3388_v50, %v2510_v12  ;;  %v3203_v37 = vpop.f32.mrb[17].mxu1 }
 0x3df   : > { %2514 = vst [vmem:[%s311_s19] sm:$0x1] %v3389_v16 }
 0x3e0   : > { %3518 = shalt.err (!%p3515_p3)
}
 0x3e1   : > { %s3519_s18 = scalar_lea.hbm %s4530_s23, 16  ;;  %s3523_s13 = scalar_lea.hbm %s4580_s8, 32 }
 0x3e2   : > { %p3520_p4 = scmp.ne.s32.totalorder %s4530_s23, %s3519_s18  ;;  %p3524_p9 = scmp.lt.u32.totalorder %s4530_s23, %s4580_s8 }
 0x3e3   : > { %p3525_p10 = scmp.lt.u32.totalorder %s3523_s13, %s3519_s18  ;;  %p3527_p12 = scmp.lt.u32.totalorder %s3519_s18, %s4530_s23 }
 0x3e4   : > { %p3521_p7 = pnand %p3520_p4, %p3657_p5 }
 0x3e5   : > { %p3526_p11 = por %p3525_p10, %p3524_p9 }
 0x3e6   : > { %p3522_p8 = pneg %p3521_p7 }
 0x3e7   : > { %p3528_p13 = por %p3527_p12, %p3526_p11 }
 0x3e9   : > { %p3529_p0 = pnand %p3528_p13, %p3522_p8 }
 0x3eb   : > { %3532 = shalt.err (!%p3529_p0)
}
 0x3ec   : > { %3462 = dma.vmem_to_hbm [thread:$0]  (%p3657_p5), %s4532_s20, 16, %s4530_s23, %s2516_s24  }
 0x3ed PF: > { %p3468_p1 = scmp.ge.s32.totalorder %s3567_s10, 2  ;;  %s2540_s21 = sand.u32 1, %s3555_s29  }
 0x3ee   : > { %s2541_s22 = scalar_lea.sflag [#allocation4], %s2540_s21 }
 0x3ef   : > { %p3465_p2 = pnand %p3468_p1, %p3661_p6 }
 0x3f1   : > { %3550 = dma.done.wait (!%p3465_p2), %s2541_s22, 16  }
 0x3f2   : > { %3552 = vsyncadd (!%p3465_p2), %s2541_s22, 4294967280  ;;  %p19_p3 = scmp.ge.s32.totalorder %s3645_s12, 4   ;;  %s4583_s29 = smov %s3559_s30 }
 0x3f3   : > { %s4584_s30 = smov %s3563_s9  ;;  %s4585_s9 = smov %s3655_s15 }
 0x3f4   : > { %s4586_s10 = smov %s3645_s12  ;;  %21 = sbr.rel (!%p19_p3) target bundleno = 5 (0x5), region = 87 }
 0x3fb   :  { %2545 = vsyncpa [#allocation4], 1 }
 0x3fc   :  { %2547 = vsyncpa [#allocation4 + $0x1], 1 }

</bundles_post_ra>
